<compile_context>
chip_gen: v5e
topology: v5e:2x2
jax: 0.10.0
libtpu: 0.0.40
codegen_flags: <defaults>
</compile_context>

<pallas_src>
import functools

import jax
import jax.numpy as jnp
from jax.experimental import pallas as pl
from jax.experimental.pallas import tpu as pltpu

DEGREE = 3
H1, H2, H3, OUT = 104, 184, 208, 1           # original (unpadded) dims
H1P, H2P, H3P = 128, 256, 256                # lane/sublane aligned padded dims
NEG_SLOPE = 0.01                             # nn.LeakyReLU() default


def _leaky_relu(x):
    # max(x, 0.01*x): 2 VALU ops (mul+max) instead of cmp+mul+select.
    return jnp.maximum(x, NEG_SLOPE * x)


def mlp_kernel(x_ref,
               w1x_ref, w1x2_ref, w1x3_ref, b1_ref,
               w2t_ref, b2_ref,
               w3t_ref, b3_ref,
               w4_ref, b4_ref,
               o_ref, *, act_dtype):
    tb = x_ref.shape[1]
    x = x_ref[...]                                       # (1, TB) f32
    xb = jnp.broadcast_to(x, (H1P, tb))                  # one sublane broadcast

    # Layer 1 (degree-3 polynomial features): Horner form, pure VPU.
    # h[j,:] = ((w1x3[j]*x + w1x2[j])*x + w1x[j])*x + b1[j]
    h = ((w1x3_ref[...] * xb + w1x2_ref[...]) * xb + w1x_ref[...]) * xb \
        + b1_ref[...]
    h = _leaky_relu(h)                                   # (H1P, TB) f32

    # Layer 2: (H2P, H1P) @ (H1P, TB) on the MXU, f32 accumulate.
    h = jnp.dot(w2t_ref[...], h.astype(jnp.bfloat16),
                preferred_element_type=jnp.float32)
    h = _leaky_relu(h.astype(act_dtype) + b2_ref[...])   # (H2P, TB)

    # Layer 3: (H3P, H2P) @ (H2P, TB).
    h = jnp.dot(w3t_ref[...], h.astype(jnp.bfloat16),
                preferred_element_type=jnp.float32)
    h = _leaky_relu(h.astype(act_dtype) + b3_ref[...])   # (H3P, TB)

    # Output layer (1 unit): cross-SUBLANE reduce (VALU adds + one tiny
    # in-vreg reduce), no 1-wide MXU matmul, no cross-lane rotates.
    y = jnp.sum(h * w4_ref[...], axis=0, keepdims=True) + b4_ref[...]
    o_ref[...] = y.astype(o_ref.dtype)                   # (1, TB) lane-dense store


def _pad2(a, rows, cols, dtype):
    out = jnp.zeros((rows, cols), dtype)
    return out.at[: a.shape[0], : a.shape[1]].set(a.astype(dtype))


def _device_kind():
    try:
        return jax.devices()[0].device_kind.lower()
    except Exception:
        return ""


def _is_old_gen(kind):
    return any(tag in kind for tag in ("v2", "v3", "v4", "v5"))


def _default_act_dtype(kind):
    # v6e/v7x have packed bf16 VALUs; v5e and older do not.
    return jnp.float32 if _is_old_gen(kind) else jnp.bfloat16


def _default_tile_b(kind):
    # Bigger tiles amortize the ~0.35us per-grid-step pipeline overhead on
    # v6e/v7x; on v5e the slower MXU already hides it and scoped VMEM is 16 MiB.
    return 512 if _is_old_gen(kind) else 2048


def prepare_params(params, act_dtype=None):
    """One-time weight prep: transpose to batch-on-lanes layout, pad to
    lane/sublane multiples, cast MXU weights (and, on v6e/v7x, biases) to bf16.
    Call once and reuse across forward calls."""
    if act_dtype is None:
        act_dtype = _default_act_dtype(_device_kind())
    w1 = params["w1"]                                            # (3, H1)
    w1x  = _pad2(w1[0].reshape(-1, 1), H1P, 1, jnp.float32)      # (128, 1)
    w1x2 = _pad2(w1[1].reshape(-1, 1), H1P, 1, jnp.float32)
    w1x3 = _pad2(w1[2].reshape(-1, 1), H1P, 1, jnp.float32)
    b1   = _pad2(params["b1"].reshape(-1, 1), H1P, 1, jnp.float32)
    w2t  = _pad2(params["w2"].T, H2P, H1P, jnp.bfloat16)         # (256, 128)
    b2   = _pad2(params["b2"].reshape(-1, 1), H2P, 1, act_dtype) # (256, 1)
    w3t  = _pad2(params["w3"].T, H3P, H2P, jnp.bfloat16)         # (256, 256)
    b3   = _pad2(params["b3"].reshape(-1, 1), H3P, 1, act_dtype) # (256, 1)
    w4   = _pad2(params["w4"].reshape(-1, 1), H3P, 1, jnp.float32)  # (256, 1)
    b4   = params["b4"].reshape(1, 1).astype(jnp.float32)        # (1, 1)
    return (w1x, w1x2, w1x3, b1, w2t, b2, w3t, b3, w4, b4)


def neural_net_forward(x, prep, tile_b=None):
    """x: (B, 1) f32.  prep: output of prepare_params.  Returns (B, 1) f32."""
    B = x.shape[0]
    kind = _device_kind()
    if tile_b is None:
        tile_b = _default_tile_b(kind)
    tile_b = max(128, (tile_b // 128) * 128)          # lane-aligned batch tile

    bp = ((B + 127) // 128) * 128                     # pad batch to lane multiple
    tb = min(tile_b, bp)
    # v7x: keep >=2 grid steps so ("parallel",) can shard batch over both TCs.
    if ("v7" in kind or "7x" in kind) and bp > 128 and bp <= tb:
        tb = max(128, ((bp // 2 + 127) // 128) * 128)
    bp = ((bp + tb - 1) // tb) * tb                   # pad batch to tile multiple

    # Batch lives on the lane axis: input/output blocks are lane-dense (1, tb).
    xt = jnp.zeros((1, bp), jnp.float32).at[0, :B].set(x[:, 0].astype(jnp.float32))

    (w1x, w1x2, w1x3, b1, w2t, b2, w3t, b3, w4, b4) = prep
    kernel = functools.partial(mlp_kernel, act_dtype=b2.dtype)

    io_spec = pl.BlockSpec((1, tb), lambda i: (0, i))

    def const_spec(a):                                # whole-array resident block
        return pl.BlockSpec(a.shape, lambda i: (0, 0))

    out = pl.pallas_call(
        kernel,
        out_shape=jax.ShapeDtypeStruct((1, bp), jnp.float32),
        grid=(bp // tb,),
        in_specs=[io_spec,
                  const_spec(w1x), const_spec(w1x2), const_spec(w1x3),
                  const_spec(b1),
                  const_spec(w2t), const_spec(b2),
                  const_spec(w3t), const_spec(b3),
                  const_spec(w4), const_spec(b4)],
        out_specs=io_spec,
        compiler_params=pltpu.CompilerParams(
            dimension_semantics=("parallel",),        # megacore sharding on v7x
            vmem_limit_bytes=48 * 1024 * 1024),
    )(xt, w1x, w1x2, w1x3, b1, w2t, b2, w3t, b3, w4, b4)
    return out[0, :B].reshape(B, 1)


def init_params(key):
    """Deterministic init mimicking nn.Linear's U(-1/sqrt(fan_in), 1/sqrt(fan_in))."""
    dims = [(1 * DEGREE, H1), (H1, H2), (H2, H3), (H3, OUT)]
    params = {}
    for idx, (fan_in, fan_out) in enumerate(dims, start=1):
        key, kw, kb = jax.random.split(key, 3)
        bound = 1.0 / (fan_in ** 0.5)
        params[f"w{idx}"] = jax.random.uniform(
            kw, (fan_in, fan_out), jnp.float32, -bound, bound)
        params[f"b{idx}"] = jax.random.uniform(
            kb, (1, fan_out), jnp.float32, -bound, bound)
    return params


def reference_forward(x, params):
    """Pure-JAX f32 reference matching the PyTorch module exactly."""
    feats = jnp.concatenate([x ** i for i in range(1, DEGREE + 1)], axis=1)
    h = jax.nn.leaky_relu(feats @ params["w1"] + params["b1"], NEG_SLOPE)
    h = jax.nn.leaky_relu(h @ params["w2"] + params["b2"], NEG_SLOPE)
    h = jax.nn.leaky_relu(h @ params["w3"] + params["b3"], NEG_SLOPE)
    return h @ params["w4"] + params["b4"]


if __name__ == "__main__":
    key = jax.random.PRNGKey(0)
    key, kx = jax.random.split(key)
    B = 8
    # TODO(synk): sklearn StandardScaler preprocessing lives outside the module;
    # inputs here are already standardized (unit-normal) scalars.
    x = jax.random.normal(kx, (B, 1), jnp.float32)
    params = init_params(key)

    prep = prepare_params(params)            # one-time weight prep
    out = neural_net_forward(x, prep)
    jax.block_until_ready(out)

    ref = reference_forward(x, params)
    assert out.shape == (B, OUT)
    # bf16 MXU inputs (+ bf16 bias/activation on v6e/v7x) => bf16 tolerance.
    err = float(jnp.max(jnp.abs(out - ref)))
    assert jnp.allclose(out, ref, atol=3e-2, rtol=3e-2), f"max abs err {err}"

    # Exercise the multi-step grid / batch-padding path as well.
    key, kx2 = jax.random.split(key)
    B2 = 300
    x2 = jax.random.normal(kx2, (B2, 1), jnp.float32)
    out2 = neural_net_forward(x2, prep, tile_b=128)
    jax.block_until_ready(out2)
    ref2 = reference_forward(x2, params)
    err2 = float(jnp.max(jnp.abs(out2 - ref2)))
    assert out2.shape == (B2, OUT)
    assert jnp.allclose(out2, ref2, atol=3e-2, rtol=3e-2), f"max abs err {err2}"

    print("KERNEL_OK")
</pallas_src>

<mosaic_0001>
module attributes {stable_mosaic.version = 11 : i64} {
  func.func @mlp_kernel(%arg0: i32, %arg1: memref<1x128xf32, #tpu.memory_space<vmem>>, %arg2: memref<128x1xf32, #tpu.memory_space<vmem>>, %arg3: memref<128x1xf32, #tpu.memory_space<vmem>>, %arg4: memref<128x1xf32, #tpu.memory_space<vmem>>, %arg5: memref<128x1xf32, #tpu.memory_space<vmem>>, %arg6: memref<256x128xbf16, #tpu.memory_space<vmem>>, %arg7: memref<256x1xbf16, #tpu.memory_space<vmem>>, %arg8: memref<256x256xbf16, #tpu.memory_space<vmem>>, %arg9: memref<256x1xbf16, #tpu.memory_space<vmem>>, %arg10: memref<256x1xf32, #tpu.memory_space<vmem>>, %arg11: memref<1x1xf32, #tpu.memory_space<vmem>>, %arg12: memref<1x128xf32, #tpu.memory_space<vmem>>) attributes {dimension_semantics = [#tpu.dimension_semantics<parallel>], iteration_bounds = array<i64: 1>, scalar_prefetch = 0 : i64, scratch_operands = 0 : i64, tpu.core_type = #tpu.core_type<tc>, window_params = [{transform_indices = @transform_0, window_bounds = array<i64: 1, 128>}, {pipeline_mode = #tpu.pipeline_mode<synchronous>, transform_indices = @transform_1, window_bounds = array<i64: 128, 1>}, {pipeline_mode = #tpu.pipeline_mode<synchronous>, transform_indices = @transform_2, window_bounds = array<i64: 128, 1>}, {pipeline_mode = #tpu.pipeline_mode<synchronous>, transform_indices = @transform_3, window_bounds = array<i64: 128, 1>}, {pipeline_mode = #tpu.pipeline_mode<synchronous>, transform_indices = @transform_4, window_bounds = array<i64: 128, 1>}, {pipeline_mode = #tpu.pipeline_mode<synchronous>, transform_indices = @transform_5, window_bounds = array<i64: 256, 128>}, {pipeline_mode = #tpu.pipeline_mode<synchronous>, transform_indices = @transform_6, window_bounds = array<i64: 256, 1>}, {pipeline_mode = #tpu.pipeline_mode<synchronous>, transform_indices = @transform_7, window_bounds = array<i64: 256, 256>}, {pipeline_mode = #tpu.pipeline_mode<synchronous>, transform_indices = @transform_8, window_bounds = array<i64: 256, 1>}, {pipeline_mode = #tpu.pipeline_mode<synchronous>, transform_indices = @transform_9, window_bounds = array<i64: 256, 1>}, {pipeline_mode = #tpu.pipeline_mode<synchronous>, transform_indices = @transform_10, window_bounds = array<i64: 1, 1>}, {transform_indices = @transform_11, window_bounds = array<i64: 1, 128>}]} {
    %c0 = arith.constant 0 : index
    %c0_0 = arith.constant 0 : index
    %0 = vector.load %arg1[%c0, %c0_0] : memref<1x128xf32, #tpu.memory_space<vmem>>, vector<1x128xf32>
    %1 = vector.shape_cast %0 : vector<1x128xf32> to vector<1x128xf32>
    %2 = vector.broadcast %1 : vector<1x128xf32> to vector<128x128xf32>
    %c0_1 = arith.constant 0 : index
    %c0_2 = arith.constant 0 : index
    %3 = vector.load %arg4[%c0_1, %c0_2] : memref<128x1xf32, #tpu.memory_space<vmem>>, vector<128x1xf32>
    %4 = vector.broadcast %3 : vector<128x1xf32> to vector<128x128xf32>
    %5 = arith.mulf %4, %2 : vector<128x128xf32>
    %c0_3 = arith.constant 0 : index
    %c0_4 = arith.constant 0 : index
    %6 = vector.load %arg3[%c0_3, %c0_4] : memref<128x1xf32, #tpu.memory_space<vmem>>, vector<128x1xf32>
    %7 = vector.broadcast %6 : vector<128x1xf32> to vector<128x128xf32>
    %8 = arith.addf %5, %7 : vector<128x128xf32>
    %9 = arith.mulf %8, %2 : vector<128x128xf32>
    %c0_5 = arith.constant 0 : index
    %c0_6 = arith.constant 0 : index
    %10 = vector.load %arg2[%c0_5, %c0_6] : memref<128x1xf32, #tpu.memory_space<vmem>>, vector<128x1xf32>
    %11 = vector.broadcast %10 : vector<128x1xf32> to vector<128x128xf32>
    %12 = arith.addf %9, %11 : vector<128x128xf32>
    %13 = arith.mulf %12, %2 : vector<128x128xf32>
    %c0_7 = arith.constant 0 : index
    %c0_8 = arith.constant 0 : index
    %14 = vector.load %arg5[%c0_7, %c0_8] : memref<128x1xf32, #tpu.memory_space<vmem>>, vector<128x1xf32>
    %15 = vector.broadcast %14 : vector<128x1xf32> to vector<128x128xf32>
    %16 = arith.addf %13, %15 : vector<128x128xf32>
    %cst = arith.constant 0.00999999977 : f32
    %17 = vector.broadcast %cst : f32 to vector<128x128xf32>
    %18 = arith.mulf %17, %16 : vector<128x128xf32>
    %19 = arith.maximumf %16, %18 : vector<128x128xf32>
    %c0_9 = arith.constant 0 : index
    %c0_10 = arith.constant 0 : index
    %20 = vector.load %arg6[%c0_9, %c0_10] : memref<256x128xbf16, #tpu.memory_space<vmem>>, vector<256x128xbf16>
    %21 = arith.truncf %19 : vector<128x128xf32> to vector<128x128xbf16>
    %cst_11 = arith.constant dense<0.000000e+00> : vector<256x128xf32>
    %22 = tpu.matmul %20, %21, %cst_11 {dimension_numbers = #tpu.dot_dimension_numbers<[1], [0], [0], [1], [0, 0, 1, 1], [], []>} : vector<256x128xbf16>, vector<128x128xbf16>, vector<256x128xf32> -> vector<256x128xf32>
    %23 = arith.truncf %22 : vector<256x128xf32> to vector<256x128xbf16>
    %c0_12 = arith.constant 0 : index
    %c0_13 = arith.constant 0 : index
    %24 = vector.load %arg7[%c0_12, %c0_13] : memref<256x1xbf16, #tpu.memory_space<vmem>>, vector<256x1xbf16>
    %25 = vector.broadcast %24 : vector<256x1xbf16> to vector<256x128xbf16>
    %26 = arith.addf %23, %25 : vector<256x128xbf16>
    %cst_14 = arith.constant 1.000980e-02 : bf16
    %27 = vector.broadcast %cst_14 : bf16 to vector<256x128xbf16>
    %28 = arith.mulf %27, %26 : vector<256x128xbf16>
    %29 = arith.maximumf %26, %28 : vector<256x128xbf16>
    %c0_15 = arith.constant 0 : index
    %c0_16 = arith.constant 0 : index
    %30 = vector.load %arg8[%c0_15, %c0_16] : memref<256x256xbf16, #tpu.memory_space<vmem>>, vector<256x256xbf16>
    %cst_17 = arith.constant dense<0.000000e+00> : vector<256x128xf32>
    %31 = tpu.matmul %30, %29, %cst_17 {dimension_numbers = #tpu.dot_dimension_numbers<[1], [0], [0], [1], [0, 0, 1, 1], [], []>} : vector<256x256xbf16>, vector<256x128xbf16>, vector<256x128xf32> -> vector<256x128xf32>
    %32 = arith.truncf %31 : vector<256x128xf32> to vector<256x128xbf16>
    %c0_18 = arith.constant 0 : index
    %c0_19 = arith.constant 0 : index
    %33 = vector.load %arg9[%c0_18, %c0_19] : memref<256x1xbf16, #tpu.memory_space<vmem>>, vector<256x1xbf16>
    %34 = vector.broadcast %33 : vector<256x1xbf16> to vector<256x128xbf16>
    %35 = arith.addf %32, %34 : vector<256x128xbf16>
    %cst_20 = arith.constant 1.000980e-02 : bf16
    %36 = vector.broadcast %cst_20 : bf16 to vector<256x128xbf16>
    %37 = arith.mulf %36, %35 : vector<256x128xbf16>
    %38 = arith.maximumf %35, %37 : vector<256x128xbf16>
    %c0_21 = arith.constant 0 : index
    %c0_22 = arith.constant 0 : index
    %39 = vector.load %arg10[%c0_21, %c0_22] : memref<256x1xf32, #tpu.memory_space<vmem>>, vector<256x1xf32>
    %40 = arith.extf %38 : vector<256x128xbf16> to vector<256x128xf32>
    %41 = vector.broadcast %39 : vector<256x1xf32> to vector<256x128xf32>
    %42 = arith.mulf %40, %41 : vector<256x128xf32>
    %cst_23 = arith.constant dense<0.000000e+00> : vector<128xf32>
    %43 = vector.multi_reduction <add>, %42, %cst_23 [0] : vector<256x128xf32> to vector<128xf32>
    %44 = vector.shape_cast %43 : vector<128xf32> to vector<1x128xf32>
    %c0_24 = arith.constant 0 : index
    %c0_25 = arith.constant 0 : index
    %45 = vector.load %arg11[%c0_24, %c0_25] : memref<1x1xf32, #tpu.memory_space<vmem>>, vector<1x1xf32>
    %46 = vector.broadcast %45 : vector<1x1xf32> to vector<1x128xf32>
    %47 = arith.addf %44, %46 : vector<1x128xf32>
    %c0_26 = arith.constant 0 : index
    %c0_27 = arith.constant 0 : index
    %48 = vector.load %arg12[%c0_26, %c0_27] : memref<1x128xf32, #tpu.memory_space<vmem>>, vector<1x128xf32>
    tpu.vector_store %arg12[%c0_26, %c0_27], %47 {strides = array<i32>} : memref<1x128xf32, #tpu.memory_space<vmem>>, vector<1x128xf32>,
    return
  }
  func.func @transform_0(%arg0: i32) -> (i32, i32) {
    %c0_i32 = arith.constant 0 : i32
    %c0_i32_0 = arith.constant 0 : i32
    return %c0_i32, %arg0 : i32, i32
  }
  func.func @transform_1(%arg0: i32) -> (i32, i32) {
    %c0_i32 = arith.constant 0 : i32
    %c0_i32_0 = arith.constant 0 : i32
    %c0_i32_1 = arith.constant 0 : i32
    return %c0_i32, %c0_i32_0 : i32, i32
  }
  func.func @transform_2(%arg0: i32) -> (i32, i32) {
    %c0_i32 = arith.constant 0 : i32
    %c0_i32_0 = arith.constant 0 : i32
    %c0_i32_1 = arith.constant 0 : i32
    return %c0_i32, %c0_i32_0 : i32, i32
  }
  func.func @transform_3(%arg0: i32) -> (i32, i32) {
    %c0_i32 = arith.constant 0 : i32
    %c0_i32_0 = arith.constant 0 : i32
    %c0_i32_1 = arith.constant 0 : i32
    return %c0_i32, %c0_i32_0 : i32, i32
  }
  func.func @transform_4(%arg0: i32) -> (i32, i32) {
    %c0_i32 = arith.constant 0 : i32
    %c0_i32_0 = arith.constant 0 : i32
    %c0_i32_1 = arith.constant 0 : i32
    return %c0_i32, %c0_i32_0 : i32, i32
  }
  func.func @transform_5(%arg0: i32) -> (i32, i32) {
    %c0_i32 = arith.constant 0 : i32
    %c0_i32_0 = arith.constant 0 : i32
    %c0_i32_1 = arith.constant 0 : i32
    return %c0_i32, %c0_i32_0 : i32, i32
  }
  func.func @transform_6(%arg0: i32) -> (i32, i32) {
    %c0_i32 = arith.constant 0 : i32
    %c0_i32_0 = arith.constant 0 : i32
    %c0_i32_1 = arith.constant 0 : i32
    return %c0_i32, %c0_i32_0 : i32, i32
  }
  func.func @transform_7(%arg0: i32) -> (i32, i32) {
    %c0_i32 = arith.constant 0 : i32
    %c0_i32_0 = arith.constant 0 : i32
    %c0_i32_1 = arith.constant 0 : i32
    return %c0_i32, %c0_i32_0 : i32, i32
  }
  func.func @transform_8(%arg0: i32) -> (i32, i32) {
    %c0_i32 = arith.constant 0 : i32
    %c0_i32_0 = arith.constant 0 : i32
    %c0_i32_1 = arith.constant 0 : i32
    return %c0_i32, %c0_i32_0 : i32, i32
  }
  func.func @transform_9(%arg0: i32) -> (i32, i32) {
    %c0_i32 = arith.constant 0 : i32
    %c0_i32_0 = arith.constant 0 : i32
    %c0_i32_1 = arith.constant 0 : i32
    return %c0_i32, %c0_i32_0 : i32, i32
  }
  func.func @transform_10(%arg0: i32) -> (i32, i32) {
    %c0_i32 = arith.constant 0 : i32
    %c0_i32_0 = arith.constant 0 : i32
    %c0_i32_1 = arith.constant 0 : i32
    return %c0_i32, %c0_i32_0 : i32, i32
  }
  func.func @transform_11(%arg0: i32) -> (i32, i32) {
    %c0_i32 = arith.constant 0 : i32
    %c0_i32_0 = arith.constant 0 : i32
    return %c0_i32, %arg0 : i32, i32
  }
}

</mosaic_0001>

<bundles_post_ra>
// kernel: tpu_custom_call.1
= control target key start
LH: loop header
LB: loop body
LE: loop exit
PB: predicated region body
PF: predicated region fallthrough
CT: control target
= control target key end

     0   :  { %s4386_s0 = inlined_call_operand.vmem [shape: f32[1,128], index: 0, kind: input, shape index: {}]   ;;  %s4387_s1 = inlined_call_operand.vmem [shape: f32[128,1], index: 1, kind: input, shape index: {}]   ;;  %s4388_s2 = inlined_call_operand.vmem [shape: f32[128,1], index: 2, kind: input, shape index: {}]   ;;  %s4389_s3 = inlined_call_operand.vmem [shape: f32[128,1], index: 3, kind: input, shape index: {}]   ;;  %s4390_s4 = inlined_call_operand.vmem [shape: f32[128,1], index: 4, kind: input, shape index: {}]   ;;  %s4391_s5 = inlined_call_operand.vmem [shape: bf16[256,128], index: 5, kind: input, shape index: {}]   ;;  %s4392_s6 = inlined_call_operand.vmem [shape: bf16[256,1], index: 6, kind: input, shape index: {}]   ;;  %s4393_s7 = inlined_call_operand.vmem [shape: bf16[256,256], index: 7, kind: input, shape index: {}]   ;;  %s4394_s8 = inlined_call_operand.vmem [shape: bf16[256,1], index: 8, kind: input, shape index: {}]   ;;  %s4395_s9 = inlined_call_operand.vmem [shape: f32[256,1], index: 9, kind: input, shape index: {}]   ;;  %s4396_s10 = inlined_call_operand.<no memory space> [shape: f32[1,1], index: 10, kind: input, shape index: {}]   ;;  %s4397_s11 = inlined_call_operand.hbm [shape: f32[1,128], index: 11, kind: output, shape index: {}]  }
   0x1   :  { %v16_v0 = vstv %s4396_s10 }
   0x2   :  { %17 = vst [vmem:[#allocation2] sm:$0x1] %v16_v0 }
   0x3   :  { %v49_v1 = vld [vmem:[%s4389_s3 + $0x20] sm:$0xff]  ;;  %v47_v2 = vld [vmem:[%s4389_s3 + $0x10] sm:$0xff]  ;;  %v3095_v4 = vmov 0  }
   0x4   :  { %v45_v3 = vld [vmem:[%s4389_s3] sm:$0xff]  ;;  %3067 = vset.pattern.permute.xlu2 %v3095_v4  ;;  %3066 = vset.pattern.permute.xlu1 %v3095_v4 }
   0x5   :  { %3065 = vset.pattern.permute.xlu0 %v3095_v4  ;;  %83 = vperm.xlu2 %3067, %v49_v1  }
   0x6   :  { %73 = vperm.xlu1 %3066, %v47_v2   ;;  %63 = vperm.xlu0 %3065, %v45_v3  }
   0x7   :  { %18 = vsyncpa [#allocation4], 0  ;;  %v50_v5 = vld [vmem:[%s4389_s3 + $0x28] sm:$0xff]  ;;  %v48_v6 = vld [vmem:[%s4389_s3 + $0x18] sm:$0xff] }
   0x8   :  { %v46_v7 = vld [vmem:[%s4389_s3 + $0x8] sm:$0xff]  ;;  %v53_v8 = vld [vmem:[%s4389_s3 + $0x40] sm:$0xff]  ;;  %v52_v9 = vld [vmem:[%s4389_s3 + $0x38] sm:$0xff] }
   0x9   :  { %v51_v10 = vld [vmem:[%s4389_s3 + $0x30] sm:$0xff]  ;;  %v56_v11 = vld [vmem:[%s4389_s3 + $0x58] sm:$0xff]  ;;  %v54_v13 = vld [vmem:[%s4389_s3 + $0x48] sm:$0xff] }
   0xa   :  { %v55_v12 = vld [vmem:[%s4389_s3 + $0x50] sm:$0xff]  ;;  %v58_v15 = vld [vmem:[%s4389_s3 + $0x68] sm:$0xff]  ;;  %v57_v16 = vld [vmem:[%s4389_s3 + $0x60] sm:$0xff] }
   0xb   :  { %v59_v14 = vld [vmem:[%s4389_s3 + $0x70] sm:$0xff]  ;;  %v158_v17 = vld [vmem:[%s4388_s2 + $0x8] sm:$0xff]  ;;  %v157_v18 = vld [vmem:[%s4388_s2] sm:$0xff] }
   0xc   :  { %v60_v19 = vld [vmem:[%s4389_s3 + $0x78] sm:$0xff]  ;;  %v161_v20 = vld [vmem:[%s4388_s2 + $0x20] sm:$0xff]  ;;  %v159_v22 = vld [vmem:[%s4388_s2 + $0x10] sm:$0xff] }
   0xd   :  { %88 = vperm.xlu2 %3067, %v50_v5   ;;  %v160_v21 = vld [vmem:[%s4388_s2 + $0x18] sm:$0xff]  ;;  %v163_v24 = vld [vmem:[%s4388_s2 + $0x30] sm:$0xff]  ;;  %v162_v25 = vld [vmem:[%s4388_s2 + $0x28] sm:$0xff] }
   0xe   :  { %78 = vperm.xlu1 %3066, %v48_v6   ;;  %68 = vperm.xlu0 %3065, %v46_v7   ;;  %v164_v23 = vld [vmem:[%s4388_s2 + $0x38] sm:$0xff]  ;;  %v167_v26 = vld [vmem:[%s4388_s2 + $0x50] sm:$0xff]  ;;  %v166_v27 = vld [vmem:[%s4388_s2 + $0x48] sm:$0xff] }
   0xf   :  { %v165_v28 = vld [vmem:[%s4388_s2 + $0x40] sm:$0xff]  ;;  %v172_v29 = vld [vmem:[%s4388_s2 + $0x78] sm:$0xff]  ;;  %v171_v30 = vld [vmem:[%s4388_s2 + $0x70] sm:$0xff] }
  0x10   :  { %v168_v31 = vld [vmem:[%s4388_s2 + $0x58] sm:$0xff]  ;;  %v299_v32 = vld [vmem:[%s4387_s1 + $0x70] sm:$0xff]  ;;  %v170_v33 = vld [vmem:[%s4388_s2 + $0x68] sm:$0xff] }
  0x11   :  { %v169_v34 = vld [vmem:[%s4388_s2 + $0x60] sm:$0xff]  ;;  %v298_v35 = vld [vmem:[%s4387_s1 + $0x68] sm:$0xff]  ;;  %v300_v37 = vld [vmem:[%s4387_s1 + $0x78] sm:$0xff] }
  0x12   :  { %v297_v36 = vld [vmem:[%s4387_s1 + $0x60] sm:$0xff]  ;;  %v295_v39 = vld [vmem:[%s4387_s1 + $0x50] sm:$0xff]  ;;  %v428_v40 = vld [vmem:[%s4390_s4 + $0x78] sm:$0xff] }
  0x13   :  { %v427_v41 = vld [vmem:[%s4390_s4 + $0x70] sm:$0xff]  ;;  %v426_v43 = vld [vmem:[%s4390_s4 + $0x68] sm:$0xff]  ;;  %v425_v44 = vld [vmem:[%s4390_s4 + $0x60] sm:$0xff] }
  0x14   :  { %v296_v45 = vld [vmem:[%s4387_s1 + $0x58] sm:$0xff]  ;;  %v423_v47 = vld [vmem:[%s4390_s4 + $0x50] sm:$0xff]  ;;  %v294_v48 = vld [vmem:[%s4387_s1 + $0x48] sm:$0xff] }
  0x15   :  { %103 = vperm.xlu2 %3067, %v53_v8   ;;  %v293_v49 = vld [vmem:[%s4387_s1 + $0x40] sm:$0xff]  ;;  %v292_v53 = vld [vmem:[%s4387_s1 + $0x38] sm:$0xff]  ;;  %v291_v54 = vld [vmem:[%s4387_s1 + $0x30] sm:$0xff] }
  0x16   :  { %98 = vperm.xlu1 %3066, %v52_v9   ;;  %93 = vperm.xlu0 %3065, %v51_v10   ;;  %v424_v55 = vld [vmem:[%s4390_s4 + $0x58] sm:$0xff]  ;;  %v289_v59 = vld [vmem:[%s4387_s1 + $0x20] sm:$0xff]  ;;  %v422_v60 = vld [vmem:[%s4390_s4 + $0x48] sm:$0xff] }
  0x17   :  { %v421_v61 = vld [vmem:[%s4390_s4 + $0x40] sm:$0xff]  ;;  %v420_v1 = vld [vmem:[%s4390_s4 + $0x38] sm:$0xff]  ;;  %v419_v2 = vld [vmem:[%s4390_s4 + $0x30] sm:$0xff] }
  0x18   :  { %v290_v3 = vld [vmem:[%s4387_s1 + $0x28] sm:$0xff]  ;;  %v417_v7 = vld [vmem:[%s4390_s4 + $0x20] sm:$0xff]  ;;  %v288_v8 = vld [vmem:[%s4387_s1 + $0x18] sm:$0xff] }
  0x19   :  { %v287_v9 = vld [vmem:[%s4387_s1 + $0x10] sm:$0xff] }
  0x1d   :  { %118 = vperm.xlu2 %3067, %v56_v11  }
  0x1e   :  { %113 = vperm.xlu1 %3066, %v55_v12   ;;  %108 = vperm.xlu0 %3065, %v54_v13   ;;  %v286_v13 = vld [vmem:[%s4387_s1 + $0x8] sm:$0xff] }
  0x25   :  { %133 = vperm.xlu2 %3067, %v59_v14   ;;  %v285_v14 = vld [vmem:[%s4387_s1] sm:$0xff] }
  0x26   :  { %128 = vperm.xlu1 %3066, %v58_v15   ;;  %123 = vperm.xlu0 %3065, %v57_v16   ;;  %v418_v15 = vld [vmem:[%s4390_s4 + $0x28] sm:$0xff] }
  0x2d   :  { %180 = vperm.xlu2 %3067, %v158_v17  }
  0x2e   :  { %175 = vperm.xlu1 %3066, %v157_v18   ;;  %138 = vperm.xlu0 %3065, %v60_v19   ;;  %v413_v19 = vld [vmem:[%s4390_s4] sm:$0xff] }
  0x35   :  { %195 = vperm.xlu2 %3067, %v161_v20   ;;  %v416_v20 = vld [vmem:[%s4390_s4 + $0x18] sm:$0xff] }
  0x36   :  { %190 = vperm.xlu1 %3066, %v160_v21   ;;  %185 = vperm.xlu0 %3065, %v159_v22   ;;  %v415_v21 = vld [vmem:[%s4390_s4 + $0x10] sm:$0xff] }
  0x3d   :  { %210 = vperm.xlu2 %3067, %v164_v23  }
  0x3e   :  { %205 = vperm.xlu1 %3066, %v163_v24   ;;  %200 = vperm.xlu0 %3065, %v162_v25   ;;  %v815_v25 = vld [vmem:[%s4392_s6 + $0x4] sm:$0xf] }
  0x45   :  { %225 = vperm.xlu2 %3067, %v167_v26   ;;  %v814_v26 = vld [vmem:[%s4392_s6] sm:$0xf] }
  0x46   :  { %220 = vperm.xlu1 %3066, %v166_v27   ;;  %215 = vperm.xlu0 %3065, %v165_v28   ;;  %v414_v27 = vld [vmem:[%s4390_s4 + $0x8] sm:$0xff] }
  0x4d   :  { %250 = vperm.xlu2 %3067, %v172_v29  }
  0x4e   :  { %245 = vperm.xlu1 %3066, %v171_v30   ;;  %230 = vperm.xlu0 %3065, %v168_v31   ;;  %v818_v30 = vld [vmem:[%s4392_s6 + $0x10] sm:$0xf] }
  0x55   :  { %373 = vperm.xlu2 %3067, %v299_v32   ;;  %v817_v32 = vld [vmem:[%s4392_s6 + $0xc] sm:$0xf] }
  0x56   :  { %240 = vperm.xlu1 %3066, %v170_v33   ;;  %235 = vperm.xlu0 %3065, %v169_v34   ;;  %v816_v33 = vld [vmem:[%s4392_s6 + $0x8] sm:$0xf] }
  0x5d   :  { %368 = vperm.xlu2 %3067, %v298_v35  }
  0x5e   :  { %363 = vperm.xlu1 %3066, %v297_v36   ;;  %378 = vperm.xlu0 %3065, %v300_v37   ;;  %v821_v36 = vld [vmem:[%s4392_s6 + $0x1c] sm:$0xf]  ;;  %v820_v37 = vld [vmem:[%s4392_s6 + $0x18] sm:$0xf] }
  0x5f   :  { %v3269_v38 = vpop.permute.xlu2 %83 }
  0x65   :  { %353 = vperm.xlu2 %3067, %v295_v39   ;;  %v819_v39 = vld [vmem:[%s4392_s6 + $0x14] sm:$0xf] }
  0x66   :  { %506 = vperm.xlu1 %3066, %v428_v40   ;;  %501 = vperm.xlu0 %3065, %v427_v41  }
  0x67   :  { %v3280_v42 = vpop.permute.xlu2 %88 }
  0x6d   :  { %496 = vperm.xlu2 %3067, %v426_v43  }
  0x6e   :  { %491 = vperm.xlu1 %3066, %v425_v44   ;;  %358 = vperm.xlu0 %3065, %v296_v45   ;;  %v824_v44 = vld [vmem:[%s4392_s6 + $0x28] sm:$0xf]  ;;  %v823_v45 = vld [vmem:[%s4392_s6 + $0x24] sm:$0xf] }
  0x6f   :  { %v3291_v46 = vpop.permute.xlu2 %103 }
  0x75   :  { %481 = vperm.xlu2 %3067, %v423_v47   ;;  %v822_v47 = vld [vmem:[%s4392_s6 + $0x20] sm:$0xf] }
  0x76   :  { %348 = vperm.xlu1 %3066, %v294_v48   ;;  %343 = vperm.xlu0 %3065, %v293_v49   ;;  %v3441_v48 = vld [vmem:[%s4386_s0] ss:$0 sm:$0xff]  ;;  %s2789_s0 = sshll.u32 %s4397_s11, 4  ;;  %s2790_s0 = int_to_ptr.hbm [resolvable:$true] %s2789_s0 }
  0x77   :  { %v3302_v50 = vpop.permute.xlu2 %118 }
  0x78   :  { %v3304_v51 = vpop.permute.xlu1 %73  ;;  %v3306_v52 = vpop.permute.xlu0 %63 }
  0x7d   :  { %338 = vperm.xlu2 %3067, %v292_v53  }
  0x7e   :  { %333 = vperm.xlu1 %3066, %v291_v54   ;;  %486 = vperm.xlu0 %3065, %v424_v55  }
  0x7f   :  { %v3317_v56 = vpop.permute.xlu2 %133 }
  0x80   :  { %v3319_v57 = vpop.permute.xlu1 %78  ;;  %v3321_v58 = vpop.permute.xlu0 %68  ;;  %v155_v55 = vmul.f32 %v3441_v48, %v3317_v56 }
  0x85   :  { %323 = vperm.xlu2 %3067, %v289_v59   ;;  %v827_v59 = vld [vmem:[%s4392_s6 + $0x34] sm:$0xf] }
  0x86   :  { %476 = vperm.xlu1 %3066, %v422_v60   ;;  %471 = vperm.xlu0 %3065, %v421_v61  }
  0x87   :  { %v3332_v62 = vpop.permute.xlu2 %180 }
  0x88   :  { %v3334_v63 = vpop.permute.xlu1 %98  ;;  %v3336_v0 = vpop.permute.xlu0 %93 }
  0x8d   :  { %466 = vperm.xlu2 %3067, %v420_v1  }
  0x8e   :  { %461 = vperm.xlu1 %3066, %v419_v2   ;;  %328 = vperm.xlu0 %3065, %v290_v3   ;;  %v826_v2 = vld [vmem:[%s4392_s6 + $0x30] sm:$0xf]  ;;  %v825_v3 = vld [vmem:[%s4392_s6 + $0x2c] sm:$0xf] }
  0x8f   :  { %v3347_v4 = vpop.permute.xlu2 %195 }
  0x90   :  { %v3349_v5 = vpop.permute.xlu1 %113  ;;  %v3351_v6 = vpop.permute.xlu0 %108 }
  0x95   :  { %451 = vperm.xlu2 %3067, %v417_v7  }
  0x96   :  { %318 = vperm.xlu1 %3066, %v288_v8   ;;  %313 = vperm.xlu0 %3065, %v287_v9  }
  0x97   :  { %v3362_v10 = vpop.permute.xlu2 %210 }
  0x98   :  { %v129_v11 = vpop.permute.xlu1 %128  ;;  %v3364_v12 = vpop.permute.xlu0 %123 }
  0x99   :  { %v154_v60 = vmul.f32 %v3441_v48, %v129_v11 }
  0x9d   :  { %308 = vperm.xlu2 %3067, %v286_v13  }
  0x9e   :  { %303 = vperm.xlu1 %3066, %v285_v14   ;;  %456 = vperm.xlu0 %3065, %v418_v15  }
  0x9f   :  { %v3375_v16 = vpop.permute.xlu2 %225 }
  0xa0   :  { %v3377_v17 = vpop.permute.xlu1 %175  ;;  %v139_v18 = vpop.permute.xlu0 %138 }
  0xa1   :  { %v156_v61 = vmul.f32 %v3441_v48, %v139_v18  ;;  %v830_v18 = vld [vmem:[%s4392_s6 + $0x40] sm:$0xf] }
  0xa5   :  { %431 = vperm.xlu2 %3067, %v413_v19   ;;  %v153_v19 = vmul.f32 %v3441_v48, %v3364_v12 }
  0xa6   :  { %446 = vperm.xlu1 %3066, %v416_v20   ;;  %441 = vperm.xlu0 %3065, %v415_v21   ;;  %v829_v21 = vld [vmem:[%s4392_s6 + $0x3c] sm:$0xf] }
  0xa7   :  { %v251_v24 = vpop.permute.xlu2 %250 }
  0xa8   :  { %v3388_v22 = vpop.permute.xlu1 %190  ;;  %v3390_v23 = vpop.permute.xlu0 %185  ;;  %v268_v7 = vadd.f32 %v251_v24, %v156_v61  ;;  %v828_v24 = vld [vmem:[%s4392_s6 + $0x38] sm:$0xf]  ;;  %v151_v61 = vmul.f32 %v3441_v48, %v3349_v5 }
  0xa9   :  { %v844_v5 = vld [vmem:[%s4392_s6 + $0x78] sm:$0xf] }
  0xaa   :  { %v284_v15 = vmul.f32 %v3441_v48, %v268_v7 }
  0xad   :  { %857 = vperm.xlu2 %3067, %v815_v25  }
  0xae   :  { %848 = vperm.xlu1 %3066, %v814_v26   ;;  %436 = vperm.xlu0 %3065, %v414_v27  }
  0xaf   :  { %v374_v31 = vpop.permute.xlu2 %373 }
  0xb0   :  { %v3401_v28 = vpop.permute.xlu1 %205  ;;  %v3403_v29 = vpop.permute.xlu0 %200 }
  0xb5   :  { %884 = vperm.xlu2 %3067, %v818_v30  }
  0xb6   :  { %875 = vperm.xlu1 %3066, %v817_v32   ;;  %866 = vperm.xlu0 %3065, %v816_v33  }
  0xb7   :  { %v369_v40 = vpop.permute.xlu2 %368 }
  0xb8   :  { %v3414_v34 = vpop.permute.xlu1 %220  ;;  %v3416_v35 = vpop.permute.xlu0 %215 }
  0xbd   :  { %911 = vperm.xlu2 %3067, %v821_v36  }
  0xbe   :  { %902 = vperm.xlu1 %3066, %v820_v37   ;;  %893 = vperm.xlu0 %3065, %v819_v39  }
  0xbf   :  { %v3443_v49 = vpop.permute.xlu2 %353 }
  0xc0   :  { %v246_v41 = vpop.permute.xlu1 %245  ;;  %v3427_v43 = vpop.permute.xlu0 %230 }
  0xc1   :  { %v267_v1 = vadd.f32 %v246_v41, %v155_v55 }
  0xc3   :  { %v283_v56 = vmul.f32 %v3441_v48, %v267_v1 }
  0xc5   :  { %938 = vperm.xlu2 %3067, %v824_v44   ;;  %v395_v25 = vadd.f32 %v374_v31, %v283_v56  ;;  %v833_v31 = vld [vmem:[%s4392_s6 + $0x4c] sm:$0xf] }
  0xc6   :  { %929 = vperm.xlu1 %3066, %v823_v45   ;;  %920 = vperm.xlu0 %3065, %v822_v47  }
  0xc7   :  { %v497_v13 = vpop.permute.xlu2 %496  ;;  %v411_v32 = vmul.f32 %v3441_v48, %v395_v25 }
  0xc8   :  { %v241_v53 = vpop.permute.xlu1 %240  ;;  %v236_v54 = vpop.permute.xlu0 %235 }
  0xc9   :  { %v266_v8 = vadd.f32 %v241_v53, %v154_v60  ;;  %v265_v27 = vadd.f32 %v236_v54, %v153_v19  ;;  %v831_v54 = vld [vmem:[%s4392_s6 + $0x44] sm:$0xf] }
  0xcb   :  { %v282_v14 = vmul.f32 %v3441_v48, %v266_v8  ;;  %v281_v37 = vmul.f32 %v3441_v48, %v265_v27  ;;  %v263_v8 = vadd.f32 %v3375_v16, %v151_v61  ;;  %v834_v16 = vld [vmem:[%s4392_s6 + $0x50] sm:$0xf]  ;;  %v841_v61 = vld [vmem:[%s4392_s6 + $0x6c] sm:$0xf] }
  0xcd   :  { %965 = vperm.xlu2 %3067, %v827_v59   ;;  %v394_v26 = vadd.f32 %v369_v40, %v282_v14  ;;  %v832_v40 = vld [vmem:[%s4392_s6 + $0x48] sm:$0xf] }
  0xce   :  { %956 = vperm.xlu1 %3066, %v826_v2   ;;  %947 = vperm.xlu0 %3065, %v825_v3  }
  0xcf   :  { %v410_v36 = vmul.f32 %v3441_v48, %v394_v26  ;;  %v482_v44 = vpop.permute.xlu2 %481 }
  0xd0   :  { %v364_v9 = vpop.permute.xlu1 %363  ;;  %v379_v11 = vpop.permute.xlu0 %378 }
  0xd1   :  { %v396_v20 = vadd.f32 %v379_v11, %v284_v15  ;;  %v393_v45 = vadd.f32 %v364_v9, %v281_v37  ;;  %v522_v60 = vadd.f32 %v497_v13, %v410_v36  ;;  %v845_v11 = vld [vmem:[%s4392_s6 + $0x7c] sm:$0xf]  ;;  %v152_v13 = vmul.f32 %v3441_v48, %v3302_v50  ;;  %v842_v36 = vld [vmem:[%s4392_s6 + $0x70] sm:$0xf] }
  0xd2   :  { %v279_v15 = vmul.f32 %v3441_v48, %v263_v8 }
  0xd3   :  { %v412_v30 = vmul.f32 %v3441_v48, %v396_v20  ;;  %v409_v1 = vmul.f32 %v3441_v48, %v393_v45  ;;  %v538_v9 = vmul.f32 0.01, %v522_v60 }
  0xd4   :  { %v391_v50 = vadd.f32 %v3443_v49, %v279_v15  ;;  %v835_v15 = vld [vmem:[%s4392_s6 + $0x54] sm:$0xf] }
  0xd5   :  { %992 = vperm.xlu2 %3067, %v830_v18   ;;  %v264_v18 = vadd.f32 %v3427_v43, %v152_v13  ;;  %v149_v43 = vmul.f32 %v3441_v48, %v3291_v46  ;;  %v148_v46 = vmul.f32 %v3441_v48, %v3334_v63  ;;  %v839_v63 = vld [vmem:[%s4392_s6 + $0x64] sm:$0xf] }
  0xd6   :  { %983 = vperm.xlu1 %3066, %v829_v21   ;;  %974 = vperm.xlu0 %3065, %v828_v24   ;;  %v554_v21 = vmax.f32 %v522_v60, %v538_v9 }
  0xd7   :  { %v339_v19 = vpop.permute.xlu2 %338  ;;  %v280_v27 = vmul.f32 %v3441_v48, %v264_v18  ;;  %v837_v18 = vld [vmem:[%s4392_s6 + $0x5c] sm:$0xf] }
  0xd8   :  { %v507_v12 = vpop.permute.xlu1 %506  ;;  %v502_v33 = vpop.permute.xlu0 %501 }
  0xd9   :  { %v524_v39 = vadd.f32 %v507_v12, %v412_v30  ;;  %v523_v41 = vadd.f32 %v502_v33, %v411_v32  ;;  %v840_v30 = vld [vmem:[%s4392_s6 + $0x68] sm:$0xf]  ;;  %v150_v32 = vmul.f32 %v3441_v48, %v3351_v6  ;;  %v407_v12 = vmul.f32 %v3441_v48, %v391_v50  ;;  %v843_v33 = vld [vmem:[%s4392_s6 + $0x74] sm:$0xf] }
  0xdb   :  { %v540_v47 = vmul.f32 0.01, %v524_v39  ;;  %v539_v53 = vmul.f32 0.01, %v523_v41  ;;  %v262_v37 = vadd.f32 %v3414_v34, %v150_v32 }
  0xdd   :  { %v556_v55 = vmax.f32 %v524_v39, %v540_v47  ;;  %v555_v59 = vmax.f32 %v523_v41, %v539_v53  ;;  %1019 = vperm.xlu2 %3067, %v833_v31   ;;  %v261_v39 = vadd.f32 %v3416_v35, %v149_v43  ;;  %v519_v41 = vadd.f32 %v482_v44, %v407_v12 }
  0xde   :  { %1010 = vperm.xlu1 %3066, %v832_v40   ;;  %1001 = vperm.xlu0 %3065, %v831_v54   ;;  %v260_v40 = vadd.f32 %v3362_v10, %v148_v46  ;;  %v278_v34 = vmul.f32 %v3441_v48, %v262_v37  ;;  %v147_v54 = vmul.f32 %v3441_v48, %v3336_v0  ;;  %v838_v10 = vld [vmem:[%s4392_s6 + $0x60] sm:$0xf] }
  0xdf   :  { %v596_v2 = vpack.c.bf16 %v556_v55, %v555_v59  ;;  %v3522_v6 = vpop.permute.xlu2 %323  ;;  %v535_v53 = vmul.f32 0.01, %v519_v41  ;;  %v277_v35 = vmul.f32 %v3441_v48, %v261_v39  ;;  %v1842_v39 = vld [vmem:[%s4394_s8 + $0x8] sm:$0xf] }
  0xe0   :  { %v492_v3 = vpop.permute.xlu1 %491  ;;  %v359_v7 = vpop.permute.xlu0 %358 }
  0xe1   :  { %v521_v56 = vadd.f32 %v492_v3, %v409_v1  ;;  %693 = vmatpush.bf16.msra.mxu0 %v596_v2  ;;  %3038 = vmatpush.bf16.msra.mxu3 %v596_v2  ;;  %v392_v49 = vadd.f32 %v359_v7, %v280_v27  ;;  %v259_v1 = vadd.f32 %v3401_v28, %v147_v54 }
  0xe2   :  { %v551_v2 = vmax.f32 %v519_v41, %v535_v53  ;;  %v276_v3 = vmul.f32 %v3441_v48, %v260_v40  ;;  %v146_v41 = vmul.f32 %v3441_v48, %v3280_v42  ;;  %v143_v54 = vmul.f32 %v3441_v48, %v3304_v51 }
  0xe3   :  { %v537_v14 = vmul.f32 0.01, %v521_v56  ;;  %v408_v31 = vmul.f32 %v3441_v48, %v392_v49 }
  0xe4   :  { %v388_v0 = vadd.f32 %v339_v19, %v276_v3  ;;  %v255_v51 = vadd.f32 %v3390_v23, %v143_v54  ;;  %v1857_v54 = vld [vmem:[%s4394_s8 + $0x44] sm:$0xf] }
  0xe5   :  { %v553_v20 = vmax.f32 %v521_v56, %v537_v14  ;;  %1127 = vperm.xlu2 %3067, %v845_v11   ;;  %v275_v14 = vmul.f32 %v3441_v48, %v259_v1 }
  0xe6   :  { %1118 = vperm.xlu1 %3066, %v844_v5   ;;  %1028 = vperm.xlu0 %3065, %v834_v16   ;;  %v404_v19 = vmul.f32 %v3441_v48, %v388_v0 }
  0xe7   :  { %v595_v24 = vpack.c.bf16 %v554_v21, %v553_v20  ;;  %v467_v28 = vpop.permute.xlu2 %466 }
  0xe8   :  { %v349_v25 = vpop.permute.xlu1 %348  ;;  %v344_v26 = vpop.permute.xlu0 %343 }
  0xe9   :  { %694 = vmatpush.bf16.msra.mxu0 %v595_v24  ;;  %3039 = vmatpush.bf16.msra.mxu3 %v595_v24  ;;  %v390_v55 = vadd.f32 %v349_v25, %v278_v34  ;;  %v389_v59 = vadd.f32 %v344_v26, %v277_v35  ;;  %v836_v24 = vld [vmem:[%s4392_s6 + $0x58] sm:$0xf]  ;;  %v516_v25 = vadd.f32 %v467_v28, %v404_v19 }
  0xea   :  { %v1846_v28 = vld [vmem:[%s4394_s8 + $0x18] sm:$0xf] }
  0xeb   :  { %v406_v8 = vmul.f32 %v3441_v48, %v390_v55  ;;  %v405_v56 = vmul.f32 %v3441_v48, %v389_v59  ;;  %v144_v55 = vmul.f32 %v3441_v48, %v3319_v57 }
  0xed   :  { %1082 = vperm.xlu2 %3067, %v840_v30   ;;  %v145_v30 = vmul.f32 %v3441_v48, %v3269_v38  ;;  %v1841_v38 = vld [vmem:[%s4394_s8 + $0x4] sm:$0xf]  ;;  %v256_v1 = vadd.f32 %v3388_v22, %v144_v55  ;;  %v142_v22 = vmul.f32 %v3441_v48, %v3321_v58  ;;  %v1856_v55 = vld [vmem:[%s4394_s8 + $0x40] sm:$0xf] }
  0xee   :  { %1109 = vperm.xlu1 %3066, %v843_v33   ;;  %1100 = vperm.xlu0 %3065, %v842_v36   ;;  %v532_v36 = vmul.f32 0.01, %v516_v25 }
  0xef   :  { %v257_v33 = vadd.f32 %v3347_v4, %v145_v30  ;;  %v1840_v4 = vld [vmem:[%s4394_s8] sm:$0xf]  ;;  %v452_v53 = vpop.permute.xlu2 %451  ;;  %v254_v58 = vadd.f32 %v3332_v62, %v142_v22  ;;  %v1851_v62 = vld [vmem:[%s4394_s8 + $0x2c] sm:$0xf] }
  0xf0   :  { %v334_v45 = vpop.permute.xlu1 %333  ;;  %v487_v47 = vpop.permute.xlu0 %486  ;;  %v1867_v22 = vld [vmem:[%s4394_s8 + $0x6c] sm:$0xf] }
  0xf1   :  { %v520_v44 = vadd.f32 %v487_v47, %v408_v31  ;;  %v387_v20 = vadd.f32 %v334_v45, %v275_v14  ;;  %v258_v31 = vadd.f32 %v3403_v29, %v146_v41  ;;  %v273_v40 = vmul.f32 %v3441_v48, %v257_v33  ;;  %v1845_v29 = vld [vmem:[%s4394_s8 + $0x14] sm:$0xf] }
  0xf2   :  { %v548_v45 = vmax.f32 %v516_v25, %v532_v36  ;;  %v1849_v36 = vld [vmem:[%s4394_s8 + $0x24] sm:$0xf] }
  0xf3   :  { %v536_v60 = vmul.f32 0.01, %v520_v44  ;;  %v403_v43 = vmul.f32 %v3441_v48, %v387_v20  ;;  %v385_v42 = vadd.f32 %v3522_v6, %v273_v40 }
  0xf5   :  { %v552_v7 = vmax.f32 %v520_v44, %v536_v60  ;;  %1073 = vperm.xlu2 %3067, %v839_v63   ;;  %v274_v63 = vmul.f32 %v3441_v48, %v258_v31  ;;  %v401_v6 = vmul.f32 %v3441_v48, %v385_v42  ;;  %v1844_v60 = vld [vmem:[%s4394_s8 + $0x10] sm:$0xf] }
  0xf6   :  { %1064 = vperm.xlu1 %3066, %v838_v10   ;;  %1091 = vperm.xlu0 %3065, %v841_v61   ;;  %v1843_v10 = vld [vmem:[%s4394_s8 + $0xc] sm:$0xf]  ;;  %v141_v61 = vmul.f32 %v3441_v48, %v3306_v52 }
  0xf7   :  { %v594_v9 = vpack.c.bf16 %v552_v7, %v551_v2  ;;  %v513_v2 = vadd.f32 %v452_v53, %v401_v6  ;;  %v309_v23 = vpop.permute.xlu2 %308  ;;  %v1853_v53 = vld [vmem:[%s4394_s8 + $0x34] sm:$0xf]  ;;  %v1855_v6 = vld [vmem:[%s4394_s8 + $0x3c] sm:$0xf] }
  0xf8   :  { %v477_v11 = vpop.permute.xlu1 %476  ;;  %v472_v13 = vpop.permute.xlu0 %471  ;;  %v253_v57 = vadd.f32 %v3377_v17, %v141_v61  ;;  %v2991_v61 = vld [vmem:[%s4391_s5 + $0x8] sm:$0xff] }
  0xf9   :  { %v518_v5 = vadd.f32 %v477_v11, %v406_v8  ;;  %v517_v16 = vadd.f32 %v472_v13, %v405_v56  ;;  %695 = vmatpush.bf16.msra.mxu0 %v594_v9  ;;  %3040 = vmatpush.bf16.msra.mxu3 %v594_v9  ;;  %v529_v8 = vmul.f32 0.01, %v513_v2  ;;  %v272_v56 = vmul.f32 %v3441_v48, %v256_v1  ;;  %v1848_v11 = vld [vmem:[%s4394_s8 + $0x20] sm:$0xf]  ;;  %v3003_v1 = vld [vmem:[%s4391_s5 + $0x68] sm:$0xff] }
  0xfa   :  { %v271_v9 = vmul.f32 %v3441_v48, %v255_v51  ;;  %v269_v14 = vmul.f32 %v3441_v48, %v253_v57  ;;  %v1863_v51 = vld [vmem:[%s4394_s8 + $0x5c] sm:$0xf]  ;;  %v1861_v57 = vld [vmem:[%s4394_s8 + $0x54] sm:$0xf] }
  0xfb   :  { %v534_v21 = vmul.f32 0.01, %v518_v5  ;;  %v533_v50 = vmul.f32 0.01, %v517_v16 }
  0xfd   :  { %v550_v26 = vmax.f32 %v518_v5, %v534_v21  ;;  %v549_v27 = vmax.f32 %v517_v16, %v533_v50  ;;  %1037 = vperm.xlu2 %3067, %v835_v15   ;;  %v1847_v16 = vld [vmem:[%s4394_s8 + $0x1c] sm:$0xf]  ;;  %v545_v15 = vmax.f32 %v513_v2, %v529_v8  ;;  %v1862_v2 = vld [vmem:[%s4394_s8 + $0x58] sm:$0xf]  ;;  %v2992_v8 = vld [vmem:[%s4391_s5 + $0x10] sm:$0xff] }
  0xfe   :  { %1055 = vperm.xlu1 %3066, %v837_v18   ;;  %1046 = vperm.xlu0 %3065, %v836_v24   ;;  %v270_v24 = vmul.f32 %v3441_v48, %v254_v58  ;;  %v2486_v58 = vld [vmem:[%s4395_s9 + $0x30] sm:$0xff] }
  0xff   :  { %v593_v32 = vpack.c.bf16 %v550_v26, %v549_v27 }
 0x100   :  { %v462_v12 = vpop.permute.xlu1 %461  ;;  %v329_v49 = vpop.permute.xlu0 %328 }
 0x101   :  { %v515_v37 = vadd.f32 %v462_v12, %v403_v43  ;;  %696 = vmatpush.bf16.msra.mxu0 %v593_v32  ;;  %3041 = vmatpush.bf16.msra.mxu3 %v593_v32  ;;  %v386_v59 = vadd.f32 %v329_v49, %v274_v63  ;;  %v1850_v32 = vld [vmem:[%s4394_s8 + $0x28] sm:$0xf]  ;;  %v382_v12 = vadd.f32 %v309_v23, %v270_v24  ;;  %v2990_v63 = vld [vmem:[%s4391_s5] sm:$0xff] }
 0x102   :  { %v2480_v23 = vld [vmem:[%s4395_s9] sm:$0xff] }
 0x103   :  { %v531_v46 = vmul.f32 0.01, %v515_v37  ;;  %v402_v3 = vmul.f32 %v3441_v48, %v386_v59  ;;  %v1860_v59 = vld [vmem:[%s4394_s8 + $0x50] sm:$0xf]  ;;  %v2492_v24 = vld [vmem:[%s4395_s9 + $0x60] sm:$0xff] }
 0x105   :  { %v547_v47 = vmax.f32 %v515_v37, %v531_v46  ;;  %1892 = vperm.xlu2 %3067, %v1842_v39   ;;  %v432_v37 = vpop.permute.xlu2 %431 }
 0x106   :  { %1883 = vperm.xlu1 %3066, %v1841_v38   ;;  %1874 = vperm.xlu0 %3065, %v1840_v4   ;;  %v398_v38 = vmul.f32 %v3441_v48, %v382_v12  ;;  %v2497_v12 = vld [vmem:[%s4395_s9 + $0x88] sm:$0xff] }
 0x107   :  { %v592_v34 = vpack.c.bf16 %v548_v45, %v547_v47  ;;  %v1854_v47 = vld [vmem:[%s4394_s8 + $0x38] sm:$0xf] }
 0x108   :  { %v319_v35 = vpop.permute.xlu1 %318  ;;  %v314_v44 = vpop.permute.xlu0 %313 }
 0x109   :  { %697 = vmatpush.bf16.msra.mxu0 %v592_v34  ;;  %3042 = vmatpush.bf16.msra.mxu3 %v592_v34  ;;  %v384_v13 = vadd.f32 %v319_v35, %v272_v56  ;;  %v383_v17 = vadd.f32 %v314_v44, %v271_v9  ;;  %v1852_v34 = vld [vmem:[%s4394_s8 + $0x30] sm:$0xf]  ;;  %v1869_v9 = vld [vmem:[%s4394_s8 + $0x74] sm:$0xf] }
 0x10a   :  { %v3004_v56 = vld [vmem:[%s4391_s5 + $0x70] sm:$0xff] }
 0x10b   :  { %v400_v20 = vmul.f32 %v3441_v48, %v384_v13  ;;  %v399_v21 = vmul.f32 %v3441_v48, %v383_v17  ;;  %v1870_v13 = vld [vmem:[%s4394_s8 + $0x78] sm:$0xf] }
 0x10c   :  { %v2993_v17 = vld [vmem:[%s4391_s5 + $0x18] sm:$0xff] }
 0x10d   :  { %1919 = vperm.xlu2 %3067, %v1845_v29   ;;  %v3002_v29 = vld [vmem:[%s4391_s5 + $0x60] sm:$0xff] }
 0x10e   :  { %1910 = vperm.xlu1 %3066, %v1844_v60   ;;  %1901 = vperm.xlu0 %3065, %v1843_v10   ;;  %v1859_v60 = vld [vmem:[%s4394_s8 + $0x4c] sm:$0xf]  ;;  %v1858_v10 = vld [vmem:[%s4394_s8 + $0x48] sm:$0xf] }
 0x110   :  { %v304_v7 = vpop.permute.xlu1 %303  ;;  %v457_v0 = vpop.permute.xlu0 %456 }
 0x111   :  { %v514_v52 = vadd.f32 %v457_v0, %v402_v3  ;;  %v381_v18 = vadd.f32 %v304_v7, %v269_v14  ;;  %v1866_v3 = vld [vmem:[%s4394_s8 + $0x68] sm:$0xf]  ;;  %v1865_v7 = vld [vmem:[%s4394_s8 + $0x64] sm:$0xf]  ;;  %v1864_v0 = vld [vmem:[%s4394_s8 + $0x60] sm:$0xf] }
 0x112   :  { %v3005_v14 = vld [vmem:[%s4391_s5 + $0x78] sm:$0xff] }
 0x113   :  { %v530_v5 = vmul.f32 0.01, %v514_v52  ;;  %v397_v27 = vmul.f32 %v3441_v48, %v381_v18  ;;  %v2484_v18 = vld [vmem:[%s4395_s9 + $0x20] sm:$0xff] }
 0x115   :  { %v546_v19 = vmax.f32 %v514_v52, %v530_v5  ;;  %1946 = vperm.xlu2 %3067, %v1848_v11   ;;  %v509_v39 = vadd.f32 %v432_v37, %v397_v27  ;;  %v1868_v52 = vld [vmem:[%s4394_s8 + $0x70] sm:$0xf]  ;;  %v1871_v11 = vld [vmem:[%s4394_s8 + $0x7c] sm:$0xf]  ;;  %v2995_v27 = vld [vmem:[%s4391_s5 + $0x28] sm:$0xff] }
 0x116   :  { %1937 = vperm.xlu1 %3066, %v1847_v16   ;;  %1928 = vperm.xlu0 %3065, %v1846_v28   ;;  %v2483_v5 = vld [vmem:[%s4395_s9 + $0x18] sm:$0xff]  ;;  %v2482_v16 = vld [vmem:[%s4395_s9 + $0x10] sm:$0xff]  ;;  %v2481_v28 = vld [vmem:[%s4395_s9 + $0x8] sm:$0xff] }
 0x117   :  { %v591_v50 = vpack.c.bf16 %v546_v19, %v545_v15  ;;  %v525_v45 = vmul.f32 0.01, %v509_v39  ;;  %v2485_v15 = vld [vmem:[%s4395_s9 + $0x28] sm:$0xff]  ;;  %v2994_v19 = vld [vmem:[%s4391_s5 + $0x20] sm:$0xff] }
 0x118   :  { %v447_v25 = vpop.permute.xlu1 %446  ;;  %v442_v26 = vpop.permute.xlu0 %441  ;;  %v2501_v37 = vld [vmem:[%s4395_s9 + $0xa8] sm:$0xff] }
 0x119   :  { %v512_v30 = vadd.f32 %v447_v25, %v400_v20  ;;  %v511_v43 = vadd.f32 %v442_v26, %v399_v21  ;;  %698 = vmatpush.bf16.msra.mxu0 %v591_v50  ;;  %3043 = vmatpush.bf16.msra.mxu3 %v591_v50  ;;  %v541_v35 = vmax.f32 %v509_v39, %v525_v45  ;;  %v2489_v20 = vld [vmem:[%s4395_s9 + $0x48] sm:$0xff]  ;;  %v2488_v21 = vld [vmem:[%s4395_s9 + $0x40] sm:$0xff]  ;;  %v2487_v50 = vld [vmem:[%s4395_s9 + $0x38] sm:$0xff] }
 0x11a   :  { %v2491_v25 = vld [vmem:[%s4395_s9 + $0x58] sm:$0xff]  ;;  %v2490_v26 = vld [vmem:[%s4395_s9 + $0x50] sm:$0xff]  ;;  %v2500_v39 = vld [vmem:[%s4395_s9 + $0xa0] sm:$0xff] }
 0x11b   :  { %v528_v49 = vmul.f32 0.01, %v512_v30  ;;  %v527_v33 = vmul.f32 0.01, %v511_v43  ;;  %v2502_v45 = vld [vmem:[%s4395_s9 + $0xb0] sm:$0xff] }
 0x11d   :  { %v544_v41 = vmax.f32 %v512_v30, %v528_v49  ;;  %v543_v46 = vmax.f32 %v511_v43, %v527_v33  ;;  %1973 = vperm.xlu2 %3067, %v1851_v62   ;;  %v2495_v30 = vld [vmem:[%s4395_s9 + $0x78] sm:$0xff]  ;;  %v2494_v43 = vld [vmem:[%s4395_s9 + $0x70] sm:$0xff]  ;;  %v2493_v62 = vld [vmem:[%s4395_s9 + $0x68] sm:$0xff] }
 0x11e   :  { %1964 = vperm.xlu1 %3066, %v1850_v32   ;;  %1955 = vperm.xlu0 %3065, %v1849_v36   ;;  %v2498_v32 = vld [vmem:[%s4395_s9 + $0x90] sm:$0xff]  ;;  %v2496_v49 = vld [vmem:[%s4395_s9 + $0x80] sm:$0xff]  ;;  %v858_v36 = vpop.permute.xlu2 %857 }
 0x11f   :  { %v590_v4 = vpack.c.bf16 %v544_v41, %v543_v46  ;;  %v2996_v33 = vld [vmem:[%s4391_s5 + $0x30] sm:$0xff]  ;;  %v2499_v41 = vld [vmem:[%s4395_s9 + $0x98] sm:$0xff] }
 0x120   :  { %v437_v31 = vpop.permute.xlu0 %436  ;;  %v849_v46 = vpop.permute.xlu1 %848 }
 0x121   :  { %v510_v40 = vadd.f32 %v437_v31, %v398_v38  ;;  %699 = vmatpush.bf16.msra.mxu0 %v590_v4  ;;  %3044 = vmatpush.bf16.msra.mxu3 %v590_v4  ;;  %v2504_v4 = vld [vmem:[%s4395_s9 + $0xc0] sm:$0xff] }
 0x123   :  { %v526_v42 = vmul.f32 0.01, %v510_v40 }
 0x125   :  { %v542_v48 = vmax.f32 %v510_v40, %v526_v42  ;;  %2000 = vperm.xlu2 %3067, %v1854_v47   ;;  %v2503_v40 = vld [vmem:[%s4395_s9 + $0xb8] sm:$0xff] }
 0x126   :  { %1991 = vperm.xlu1 %3066, %v1853_v53   ;;  %1982 = vperm.xlu0 %3065, %v1852_v34   ;;  %v3786_v31 = vpop.permute.xlu2 %884  ;;  %v2997_v42 = vld [vmem:[%s4391_s5 + $0x38] sm:$0xff] }
 0x127   :  { %v589_v44 = vpack.c.bf16 %v542_v48, %v541_v35  ;;  %v2507_v34 = vld [vmem:[%s4395_s9 + $0xd8] sm:$0xff]  ;;  %v2506_v48 = vld [vmem:[%s4395_s9 + $0xd0] sm:$0xff]  ;;  %v2505_v35 = vld [vmem:[%s4395_s9 + $0xc8] sm:$0xff] }
 0x128   :  { %v3781_v38 = vpop.permute.xlu0 %866  ;;  %v3794_v47 = vpop.permute.xlu1 %875 }
 0x129   :  { %700 = vmatpush.bf16.msra.mxu0 %v589_v44  ;;  %3045 = vmatpush.bf16.msra.mxu3 %v589_v44 }
 0x12c   :  { %701 = vmatmul.bf16.vlgmr.msra.gmra.mxu0 %v2990_v63  ;;  %761 = vmatmul.bf16.vlgmr.msra.gmra.mxu3 %v3002_v29  ;;  %v3096_v29 = vmov 839922192  }
 0x12d   :  { %2027 = vperm.xlu2 %3067, %v1857_v54   ;;  %v852_v54 = vunpack.c.l.s4 %v3096_v29 }
 0x12e   :  { %2018 = vperm.xlu1 %3066, %v1856_v55   ;;  %2009 = vperm.xlu0 %3065, %v1855_v6   ;;  %v3810_v44 = vpop.permute.xlu2 %911  ;;  %v2510_v55 = vld [vmem:[%s4395_s9 + $0xf0] sm:$0xff]  ;;  %v2509_v6 = vld [vmem:[%s4395_s9 + $0xe8] sm:$0xff] }
 0x130   :  { %v3799_v53 = vpop.permute.xlu0 %893  ;;  %v3812_v63 = vpop.permute.xlu1 %902 }
 0x135   :  { %2054 = vperm.xlu2 %3067, %v1860_v59   ;;  %v2508_v59 = vld [vmem:[%s4395_s9 + $0xe0] sm:$0xff] }
 0x136   :  { %2045 = vperm.xlu1 %3066, %v1859_v60   ;;  %2036 = vperm.xlu0 %3065, %v1858_v10   ;;  %v3825_v10 = vunpack.c.0.s8 %v852_v54 }
 0x138   :  { %v3823_v60 = vpop.permute.xlu0 %920  ;;  %v890_v54 = vperm.slane %v3786_v31, %v3825_v10 }
 0x13c   :  { %706 = vmatmul.bf16.gmra.mxu0 %v2991_v61  ;;  %766 = vmatmul.bf16.gmra.mxu3 %v3003_v1  ;;  %v3827_v61 = vpop.permute.xlu2 %938  ;;  %v854_v1 = vperm.slane %v849_v46, %v3825_v10 }
 0x13d   :  { %2081 = vperm.xlu2 %3067, %v1863_v51   ;;  %v2998_v51 = vld [vmem:[%s4391_s5 + $0x40] sm:$0xff] }
 0x13e   :  { %2072 = vperm.xlu1 %3066, %v1862_v2   ;;  %2063 = vperm.xlu0 %3065, %v1861_v57   ;;  %v3833_v57 = vpop.permute.xlu1 %929 }
 0x145   :  { %2108 = vperm.xlu2 %3067, %v1866_v3  }
 0x146   :  { %2099 = vperm.xlu1 %3066, %v1865_v7   ;;  %2090 = vperm.xlu0 %3065, %v1864_v0   ;;  %v2773_v7 = vld [vmem:[#allocation2] sm:$0x1]  ;;  %v2511_v0 = vld [vmem:[%s4395_s9 + $0xf8] sm:$0xff] }
 0x14c   :  { %711 = vmatmul.bf16.gmra.mxu0 %v2992_v8  ;;  %771 = vmatmul.bf16.gmra.mxu3 %v3004_v56  ;;  %v1166_v8 = vunpack.c.l.bf16 %v854_v1 }
 0x14d   :  { %2135 = vperm.xlu2 %3067, %v1869_v9   ;;  %v3838_v9 = vpop.permute.xlu0 %947 }
 0x14e   :  { %2126 = vperm.xlu1 %3066, %v1868_v52   ;;  %2117 = vperm.xlu0 %3065, %v1867_v22  }
 0x155   :  { %2546 = vperm.xlu2 %3067, %v2480_v23   ;;  %v863_v23 = vperm.slane %v858_v36, %v3825_v10 }
 0x156   :  { %2153 = vperm.xlu1 %3066, %v1871_v11   ;;  %2144 = vperm.xlu0 %3065, %v1870_v13   ;;  %v3843_v11 = vpop.permute.xlu2 %965 }
 0x15c   :  { %716 = vmatmul.bf16.gmra.mxu0 %v2993_v17  ;;  %776 = vmatmul.bf16.gmra.mxu3 %v3005_v14 }
 0x15d   :  { %2561 = vperm.xlu2 %3067, %v2483_v5   ;;  %v1167_v5 = vunpack.c.l.bf16 %v863_v23 }
 0x15e   :  { %2556 = vperm.xlu1 %3066, %v2482_v16   ;;  %2551 = vperm.xlu0 %3065, %v2481_v28   ;;  %v3845_v16 = vpop.permute.xlu1 %956 }
 0x165   :  { %2576 = vperm.xlu2 %3067, %v2486_v58  }
 0x166   :  { %2571 = vperm.xlu1 %3066, %v2485_v15   ;;  %2566 = vperm.xlu0 %3065, %v2484_v18  }
 0x16c   :  { %721 = vmatmul.bf16.gmra.mxu0 %v2994_v19  ;;  %v872_v19 = vperm.slane %v3781_v38, %v3825_v10 }
 0x16d   :  { %2591 = vperm.xlu2 %3067, %v2489_v20   ;;  %v3851_v20 = vpop.permute.xlu0 %974 }
 0x16e   :  { %2586 = vperm.xlu1 %3066, %v2488_v21   ;;  %2581 = vperm.xlu0 %3065, %v2487_v50   ;;  %v2999_v50 = vld [vmem:[%s4391_s5 + $0x48] sm:$0xff] }
 0x175   :  { %2606 = vperm.xlu2 %3067, %v2492_v24   ;;  %v3866_v38 = vpop.permute.xlu0 %1001 }
 0x176   :  { %2601 = vperm.xlu1 %3066, %v2491_v25   ;;  %2596 = vperm.xlu0 %3065, %v2490_v26  }
 0x17c   :  { %726 = vmatmul.bf16.gmra.mxu0 %v2995_v27 }
 0x17d   :  { %2621 = vperm.xlu2 %3067, %v2495_v30   ;;  %v3856_v30 = vpop.permute.xlu2 %992 }
 0x17e   :  { %2616 = vperm.xlu1 %3066, %v2494_v43   ;;  %2611 = vperm.xlu0 %3065, %v2493_v62   ;;  %v1168_v43 = vunpack.c.l.bf16 %v872_v19 }
 0x185   :  { %2636 = vperm.xlu2 %3067, %v2498_v32  }
 0x186   :  { %2631 = vperm.xlu1 %3066, %v2497_v12   ;;  %2626 = vperm.xlu0 %3065, %v2496_v49   ;;  %v3858_v12 = vpop.permute.xlu1 %983 }
 0x18c   :  { %731 = vmatmul.bf16.gmra.mxu0 %v2996_v33 }
 0x18d   :  { %2651 = vperm.xlu2 %3067, %v2501_v37  }
 0x18e   :  { %2646 = vperm.xlu1 %3066, %v2500_v39   ;;  %2641 = vperm.xlu0 %3065, %v2499_v41   ;;  %v881_v39 = vperm.slane %v3794_v47, %v3825_v10 }
 0x195   :  { %2666 = vperm.xlu2 %3067, %v2504_v4  }
 0x196   :  { %2661 = vperm.xlu1 %3066, %v2503_v40   ;;  %2656 = vperm.xlu0 %3065, %v2502_v45   ;;  %v1169_v45 = vunpack.c.l.bf16 %v881_v39  ;;  %v917_v39 = vperm.slane %v3810_v44, %v3825_v10 }
 0x19c   :  { %736 = vmatmul.bf16.gmra.mxu0 %v2997_v42 }
 0x19d   :  { %2681 = vperm.xlu2 %3067, %v2507_v34   ;;  %v3868_v34 = vpop.permute.xlu2 %1019 }
 0x19e   :  { %2676 = vperm.xlu1 %3066, %v2506_v48   ;;  %2671 = vperm.xlu0 %3065, %v2505_v35  }
 0x1a5   :  { %2696 = vperm.xlu2 %3067, %v2510_v55   ;;  %v3874_v55 = vpop.permute.xlu1 %1010  ;;  %v3881_v23 = vpop.permute.xlu2 %1127 }
 0x1a6   :  { %2691 = vperm.xlu1 %3066, %v2509_v6   ;;  %2686 = vperm.xlu0 %3065, %v2508_v59   ;;  %v3000_v6 = vld [vmem:[%s4391_s5 + $0x50] sm:$0xff] }
 0x1a9   :  { %v702_v2 = vpop.f32.mrf.mxu0 }
 0x1aa   :  { %v782_v3 = vpack.c.bf16 %v702_v2, %v702_v2 }
 0x1ac   :  { %v1134_v56 = vunpack.c.l.bf16 %v782_v3  ;;  %741 = vmatmul.bf16.gmra.mxu0 %v2998_v51  ;;  %v1170_v3 = vunpack.c.l.bf16 %v890_v54 }
 0x1ae   :  { %v1198_v52 = vadd.f32 %v1166_v8, %v1134_v56  ;;  %2776 = vperm.xlu1 %3066, %v2773_v7   ;;  %2701 = vperm.xlu0 %3065, %v2511_v0   ;;  %v3879_v7 = vpop.permute.xlu0 %1028 }
 0x1af   :  { %v3840_v22 = vpop.f32.mrf.mxu3 }
 0x1b0   :  { %v1230_v17 = vpack.c.bf16 %v1198_v52, %v1198_v52 }
 0x1b1   :  { %v704_v13 = vpop.f32.mrf.mxu0 }
 0x1b2   :  { %v783_v14 = vpack.c.bf16 %v704_v13, %v704_v13  ;;  %v1262_v58 = vunpack.c.l.bf16 %v1230_v17  ;;  %v899_v17 = vperm.slane %v3799_v53, %v3825_v10  ;;  %v3001_v53 = vld [vmem:[%s4391_s5 + $0x58] sm:$0xff] }
 0x1b4   :  { %v1135_v28 = vunpack.c.l.bf16 %v783_v14  ;;  %v1294_v27 = vmul.f32 0.010009766, %v1262_v58  ;;  %v1171_v19 = vunpack.c.l.bf16 %v899_v17 }
 0x1b6   :  { %v1199_v15 = vadd.f32 %v1167_v5, %v1135_v28  ;;  %v1390_v33 = vmax.f32 %v1262_v58, %v1294_v27  ;;  %v1119_v28 = vpop.permute.xlu1 %1118  ;;  %v908_v27 = vperm.slane %v3812_v63, %v3825_v10 }
 0x1b7   :  { %v3847_v18 = vpop.f32.mrf.mxu3  ;;  %v1124_v63 = vperm.slane %v1119_v28, %v3825_v10 }
 0x1b8   :  { %v1231_v21 = vpack.c.bf16 %v1199_v15, %v1199_v15 }
 0x1b9   :  { %v707_v24 = vpop.f32.mrf.mxu0 }
 0x1ba   :  { %v1263_v25 = vunpack.c.l.bf16 %v1231_v21  ;;  %v784_v26 = vpack.c.bf16 %v707_v24, %v707_v24 }
 0x1bc   :  { %v1136_v62 = vunpack.c.l.bf16 %v784_v26  ;;  %746 = vmatmul.bf16.gmra.mxu0 %v2999_v50  ;;  %v1295_v32 = vmul.f32 0.010009766, %v1263_v25  ;;  %v1101_v50 = vpop.permute.xlu0 %1100 }
 0x1be   :  { %v1200_v49 = vadd.f32 %v1168_v43, %v1136_v62  ;;  %v1391_v36 = vmax.f32 %v1263_v25, %v1295_v32  ;;  %v1083_v62 = vpop.permute.xlu2 %1082 }
 0x1bf   :  { %v3860_v37 = vpop.f32.mrf.mxu3 }
 0x1c0   :  { %v3864_v41 = vpack.c.bf16 %v1391_v36, %v1390_v33  ;;  %v1232_v4 = vpack.c.bf16 %v1200_v49, %v1200_v49 }
 0x1c1   :  { %v709_v46 = vpop.f32.mrf.mxu0 }
 0x1c2   :  { %v785_v40 = vpack.c.bf16 %v709_v46, %v709_v46  ;;  %v1264_v48 = vunpack.c.l.bf16 %v1232_v4  ;;  %v1172_v46 = vunpack.c.l.bf16 %v908_v27  ;;  %v1110_v4 = vpop.permute.xlu1 %1109 }
 0x1c4   :  { %v1137_v42 = vunpack.c.l.bf16 %v785_v40  ;;  %v1296_v2 = vmul.f32 0.010009766, %v1264_v48  ;;  %v1092_v44 = vpop.permute.xlu0 %1091 }
 0x1c6   :  { %v1201_v35 = vadd.f32 %v1169_v45, %v1137_v42  ;;  %v1392_v52 = vmax.f32 %v1264_v48, %v1296_v2 }
 0x1c7   :  { %v3870_v29 = vpop.f32.mrf.mxu3 }
 0x1c8   :  { %v1233_v47 = vpack.c.bf16 %v1201_v35, %v1201_v35 }
 0x1c9   :  { %v712_v59 = vpop.f32.mrf.mxu0 }
 0x1ca   :  { %v1265_v1 = vunpack.c.l.bf16 %v1233_v47  ;;  %v786_v51 = vpack.c.bf16 %v712_v59, %v712_v59  ;;  %v1115_v47 = vperm.slane %v1110_v4, %v3825_v10 }
 0x1cc   :  { %v1138_v0 = vunpack.c.l.bf16 %v786_v51  ;;  %751 = vmatmul.bf16.gmra.mxu0 %v3000_v6  ;;  %v1297_v8 = vmul.f32 0.010009766, %v1265_v1  ;;  %v926_v51 = vperm.slane %v3823_v60, %v3825_v10  ;;  %v1195_v60 = vunpack.c.l.bf16 %v1115_v47 }
 0x1ce   :  { %v1202_v56 = vadd.f32 %v1170_v3, %v1138_v0  ;;  %v1393_v31 = vmax.f32 %v1265_v1, %v1297_v8  ;;  %v1173_v1 = vunpack.c.l.bf16 %v917_v39  ;;  %v1133_v0 = vperm.slane %v3881_v23, %v3825_v10 }
 0x1cf   :  { %v772_v13 = vpop.f32.mrf.mxu3  ;;  %v1106_v8 = vperm.slane %v1101_v50, %v3825_v10  ;;  %v1174_v23 = vunpack.c.l.bf16 %v926_v51  ;;  %v1088_v50 = vperm.slane %v1083_v62, %v3825_v10 }
 0x1d0   :  { %v3885_v14 = vpack.c.bf16 %v1393_v31, %v1392_v52  ;;  %v1234_v58 = vpack.c.bf16 %v1202_v56, %v1202_v56  ;;  %v810_v6 = vpack.c.bf16 %v772_v13, %v772_v13  ;;  %v809_v56 = vpack.c.bf16 %v3870_v29, %v3870_v29 }
 0x1d1   :  { %v714_v5 = vpop.f32.mrf.mxu0  ;;  %v1196_v13 = vunpack.c.l.bf16 %v1124_v63  ;;  %v1194_v29 = vunpack.c.l.bf16 %v1106_v8 }
 0x1d2   :  { %v787_v15 = vpack.c.bf16 %v714_v5, %v714_v5  ;;  %v1266_v24 = vunpack.c.l.bf16 %v1234_v58  ;;  %v1074_v58 = vpop.permute.xlu2 %1073  ;;  %v1161_v27 = vunpack.c.l.bf16 %v809_v56 }
 0x1d4   :  { %v1139_v21 = vunpack.c.l.bf16 %v787_v15  ;;  %v1298_v36 = vmul.f32 0.010009766, %v1266_v24  ;;  %v1097_v15 = vperm.slane %v1092_v44, %v3825_v10 }
 0x1d6   :  { %v1203_v25 = vadd.f32 %v1171_v19, %v1139_v21  ;;  %v1394_v35 = vmax.f32 %v1266_v24, %v1298_v36  ;;  %v808_v19 = vpack.c.bf16 %v3860_v37, %v3860_v37  ;;  %v1162_v21 = vunpack.c.l.bf16 %v810_v6 }
 0x1d7   :  { %v774_v26 = vpop.f32.mrf.mxu3  ;;  %v1193_v39 = vunpack.c.l.bf16 %v1097_v15  ;;  %v806_v37 = vpack.c.bf16 %v3840_v22, %v3840_v22 }
 0x1d8   :  { %v1235_v43 = vpack.c.bf16 %v1203_v25, %v1203_v25  ;;  %v811_v42 = vpack.c.bf16 %v774_v26, %v774_v26  ;;  %v807_v26 = vpack.c.bf16 %v3847_v18, %v3847_v18  ;;  %v1226_v62 = vadd.f32 %v1194_v29, %v1162_v21 }
 0x1d9   :  { %v717_v32 = vpop.f32.mrf.mxu0  ;;  %v935_v21 = vperm.slane %v3833_v57, %v3825_v10 }
 0x1da   :  { %v1267_v49 = vunpack.c.l.bf16 %v1235_v43  ;;  %v788_v33 = vpack.c.bf16 %v717_v32, %v717_v32  ;;  %v1163_v52 = vunpack.c.l.bf16 %v811_v42  ;;  %v1079_v32 = vperm.slane %v1074_v58, %v3825_v10 }
 0x1dc   :  { %v1140_v40 = vunpack.c.l.bf16 %v788_v33  ;;  %756 = vmatmul.bf16.gmra.mxu0 %v3001_v53  ;;  %v1299_v45 = vmul.f32 0.010009766, %v1267_v49  ;;  %v1227_v43 = vadd.f32 %v1195_v60, %v1163_v52  ;;  %v1197_v53 = vunpack.c.l.bf16 %v1133_v0 }
 0x1dd   :  { %v1191_v44 = vunpack.c.l.bf16 %v1079_v32  ;;  %v1258_v0 = vpack.c.bf16 %v1226_v62, %v1226_v62 }
 0x1de   :  { %v1204_v48 = vadd.f32 %v1172_v46, %v1140_v40  ;;  %v1395_v54 = vmax.f32 %v1267_v49, %v1299_v45  ;;  %v1065_v49 = vpop.permute.xlu1 %1064  ;;  %v1160_v46 = vunpack.c.l.bf16 %v808_v19  ;;  %v1192_v40 = vunpack.c.l.bf16 %v1088_v50 }
 0x1df   :  { %v777_v59 = vpop.f32.mrf.mxu3  ;;  %v1070_v18 = vperm.slane %v1065_v49, %v3825_v10 }
 0x1e0   :  { %v812_v2 = vpack.c.bf16 %v777_v59, %v777_v59  ;;  %v3898_v3 = vpack.c.bf16 %v1395_v54, %v1394_v35  ;;  %v1236_v17 = vpack.c.bf16 %v1204_v48, %v1204_v48  ;;  %v1159_v48 = vunpack.c.l.bf16 %v807_v26 }
 0x1e1   :  { %v719_v31 = vpop.f32.mrf.mxu0  ;;  %v1225_v35 = vadd.f32 %v1193_v39, %v1161_v27  ;;  %v1259_v54 = vpack.c.bf16 %v1227_v43, %v1227_v43  ;;  %v1224_v22 = vadd.f32 %v1192_v40, %v1160_v46 }
 0x1e2   :  { %v1164_v5 = vunpack.c.l.bf16 %v812_v2  ;;  %v789_v28 = vpack.c.bf16 %v719_v31, %v719_v31  ;;  %v1268_v33 = vunpack.c.l.bf16 %v1236_v17  ;;  %v1158_v2 = vunpack.c.l.bf16 %v806_v37 }
 0x1e3   :  { %v1223_v17 = vadd.f32 %v1191_v44, %v1159_v48 }
 0x1e4   :  { %v1228_v24 = vadd.f32 %v1196_v13, %v1164_v5  ;;  %v1141_v25 = vunpack.c.l.bf16 %v789_v28  ;;  %v1300_v51 = vmul.f32 0.010009766, %v1268_v33  ;;  %v1190_v13 = vunpack.c.l.bf16 %v1070_v18 }
 0x1e5   :  { %v1257_v5 = vpack.c.bf16 %v1225_v35, %v1225_v35  ;;  %v1291_v28 = vunpack.c.l.bf16 %v1259_v54  ;;  %v1255_v43 = vpack.c.bf16 %v1223_v17, %v1223_v17  ;;  %v944_v54 = vperm.slane %v3827_v61, %v3825_v10 }
 0x1e6   :  { %v1205_v36 = vadd.f32 %v1173_v1, %v1141_v25  ;;  %v1260_v45 = vpack.c.bf16 %v1228_v24, %v1228_v24  ;;  %v1396_v15 = vmax.f32 %v1268_v33, %v1300_v51  ;;  %v1222_v50 = vadd.f32 %v1190_v13, %v1158_v2 }
 0x1e7   :  { %v779_v4 = vpop.f32.mrf.mxu3  ;;  %v1256_v24 = vpack.c.bf16 %v1224_v22, %v1224_v22  ;;  %v1290_v25 = vunpack.c.l.bf16 %v1258_v0  ;;  %v1323_v37 = vmul.f32 0.010009766, %v1291_v28 }
 0x1e8   :  { %v1237_v42 = vpack.c.bf16 %v1205_v36, %v1205_v36  ;;  %v813_v63 = vpack.c.bf16 %v779_v4, %v779_v4  ;;  %v1292_v8 = vunpack.c.l.bf16 %v1260_v45  ;;  %v1254_v33 = vpack.c.bf16 %v1222_v50, %v1222_v50 }
 0x1e9   :  { %v722_v47 = vpop.f32.mrf.mxu0  ;;  %v1288_v46 = vunpack.c.l.bf16 %v1256_v24  ;;  %v1322_v40 = vmul.f32 0.010009766, %v1290_v25  ;;  %v1287_v45 = vunpack.c.l.bf16 %v1255_v43  ;;  %v1419_v35 = vmax.f32 %v1291_v28, %v1323_v37 }
 0x1ea   :  { %v1269_v6 = vunpack.c.l.bf16 %v1237_v42  ;;  %v1165_v59 = vunpack.c.l.bf16 %v813_v63  ;;  %v790_v1 = vpack.c.bf16 %v722_v47, %v722_v47  ;;  %v1324_v26 = vmul.f32 0.010009766, %v1292_v8 }
 0x1eb   :  { %v1286_v47 = vunpack.c.l.bf16 %v1254_v33  ;;  %v1319_v2 = vmul.f32 0.010009766, %v1287_v45 }
 0x1ec   :  { %v1229_v56 = vadd.f32 %v1197_v53, %v1165_v59  ;;  %v1142_v52 = vunpack.c.l.bf16 %v790_v1  ;;  %v1301_v31 = vmul.f32 0.010009766, %v1269_v6  ;;  %v1289_v53 = vunpack.c.l.bf16 %v1257_v5 }
 0x1ed   :  { %v1420_v4 = vmax.f32 %v1292_v8, %v1324_v26  ;;  %v1418_v59 = vmax.f32 %v1290_v25, %v1322_v40  ;;  %v1320_v1 = vmul.f32 0.010009766, %v1288_v46  ;;  %v1318_v61 = vmul.f32 0.010009766, %v1286_v47 }
 0x1ee   :  { %v1261_v58 = vpack.c.bf16 %v1229_v56, %v1229_v56  ;;  %v1206_v60 = vadd.f32 %v1174_v23, %v1142_v52  ;;  %v1397_v19 = vmax.f32 %v1269_v6, %v1301_v31  ;;  %v1175_v23 = vunpack.c.l.bf16 %v935_v21 }
 0x1ef   :  { %v1321_v42 = vmul.f32 0.010009766, %v1289_v53  ;;  %v3924_v8 = vpack.c.bf16 %v1419_v35, %v1418_v59  ;;  %v1176_v52 = vunpack.c.l.bf16 %v944_v54  ;;  %v1416_v13 = vmax.f32 %v1288_v46, %v1320_v1 }
 0x1f0   :  { %v1293_v29 = vunpack.c.l.bf16 %v1261_v58  ;;  %v3917_v27 = vpack.c.bf16 %v1397_v19, %v1396_v15  ;;  %v1238_v49 = vpack.c.bf16 %v1206_v60, %v1206_v60  ;;  %v1415_v5 = vmax.f32 %v1287_v45, %v1319_v2 }
 0x1f1   :  { %v724_v32 = vpop.f32.mrf.mxu0  ;;  %v1417_v44 = vmax.f32 %v1289_v53, %v1321_v42  ;;  %v953_v19 = vperm.slane %v3838_v9, %v3825_v10  ;;  %v1414_v21 = vmax.f32 %v1286_v47, %v1318_v61  ;;  %v971_v42 = vperm.slane %v3843_v11, %v3825_v10 }
 0x1f2   :  { %v791_v36 = vpack.c.bf16 %v724_v32, %v724_v32  ;;  %v1325_v39 = vmul.f32 0.010009766, %v1293_v29  ;;  %v1270_v63 = vunpack.c.l.bf16 %v1238_v49  ;;  %v980_v1 = vperm.slane %v3851_v20, %v3825_v10 }
 0x1f3   :  { %v3927_v58 = vpack.c.bf16 %v1417_v44, %v1416_v13  ;;  %v3934_v26 = vpack.c.bf16 %v1415_v5, %v1414_v21  ;;  %v1177_v43 = vunpack.c.l.bf16 %v953_v19  ;;  %v1179_v47 = vunpack.c.l.bf16 %v971_v42 }
 0x1f4   :  { %v1143_v62 = vunpack.c.l.bf16 %v791_v36  ;;  %v1421_v57 = vmax.f32 %v1293_v29, %v1325_v39  ;;  %v1302_v56 = vmul.f32 0.010009766, %v1270_v63  ;;  %v962_v36 = vperm.slane %v3845_v16, %v3825_v10 }
 0x1f6   :  { %v1207_v18 = vadd.f32 %v1175_v23, %v1143_v62  ;;  %v3919_v48 = vpack.c.bf16 %v1421_v57, %v1420_v4  ;;  %v1398_v60 = vmax.f32 %v1270_v63, %v1302_v56  ;;  %v1178_v46 = vunpack.c.l.bf16 %v962_v36 }
 0x1f7   :  { %v1180_v56 = vunpack.c.l.bf16 %v980_v1 }
 0x1f8   :  { %v1239_v6 = vpack.c.bf16 %v1207_v18, %v1207_v18  ;;  %1719 = vmatpush.bf16.msra.mxu2 %v3919_v48 }
 0x1f9   :  { %v727_v51 = vpop.f32.mrf.mxu0 }
 0x1fa   :  { %v1271_v22 = vunpack.c.l.bf16 %v1239_v6  ;;  %v792_v0 = vpack.c.bf16 %v727_v51, %v727_v51 }
 0x1fc   :  { %v1144_v31 = vunpack.c.l.bf16 %v792_v0  ;;  %1720 = vmatpush.bf16.msra.mxu2 %v3924_v8  ;;  %v1303_v17 = vmul.f32 0.010009766, %v1271_v22 }
 0x1fe   :  { %v1208_v28 = vadd.f32 %v1176_v52, %v1144_v31  ;;  %v1399_v15 = vmax.f32 %v1271_v22, %v1303_v17  ;;  %v989_v17 = vperm.slane %v3858_v12, %v3825_v10 }
 0x200   :  { %1721 = vmatpush.bf16.msra.mxu2 %v3927_v58  ;;  %v3932_v50 = vpack.c.bf16 %v1399_v15, %v1398_v60  ;;  %v1240_v25 = vpack.c.bf16 %v1208_v28, %v1208_v28  ;;  %v1181_v19 = vunpack.c.l.bf16 %v989_v17  ;;  %v2960_v17 = vld [vmem:[%s4393_s7 + $0xc0] sm:$0xf] }
 0x201   :  { %v729_v24 = vpop.f32.mrf.mxu0 }
 0x202   :  { %v793_v29 = vpack.c.bf16 %v729_v24, %v729_v24  ;;  %v1272_v32 = vunpack.c.l.bf16 %v1240_v25  ;;  %v998_v25 = vperm.slane %v3856_v30, %v3825_v10 }
 0x204   :  { %v1145_v53 = vunpack.c.l.bf16 %v793_v29  ;;  %1722 = vmatpush.bf16.msra.mxu2 %v3934_v26  ;;  %v1304_v33 = vmul.f32 0.010009766, %v1272_v32  ;;  %v1182_v36 = vunpack.c.l.bf16 %v998_v25 }
 0x206   :  { %v1209_v49 = vadd.f32 %v1177_v43, %v1145_v53  ;;  %v1400_v40 = vmax.f32 %v1272_v32, %v1304_v33  ;;  %v1007_v33 = vperm.slane %v3866_v38, %v3825_v10 }
 0x208   :  { %v1241_v9 = vpack.c.bf16 %v1209_v49, %v1209_v49  ;;  %v1183_v30 = vunpack.c.l.bf16 %v1007_v33 }
 0x209   :  { %v732_v39 = vpop.f32.mrf.mxu0 }
 0x20a   :  { %v1273_v37 = vunpack.c.l.bf16 %v1241_v9  ;;  %v794_v23 = vpack.c.bf16 %v732_v39, %v732_v39 }
 0x20c   :  { %v1146_v62 = vunpack.c.l.bf16 %v794_v23  ;;  %v1305_v4 = vmul.f32 0.010009766, %v1273_v37 }
 0x20e   :  { %v1210_v57 = vadd.f32 %v1178_v46, %v1146_v62  ;;  %v1401_v45 = vmax.f32 %v1273_v37, %v1305_v4 }
 0x210   :  { %v1427_v63 = vpack.c.bf16 %v1401_v45, %v1400_v40  ;;  %v1242_v35 = vpack.c.bf16 %v1210_v57, %v1210_v57 }
 0x211   :  { %v734_v18 = vpop.f32.mrf.mxu0 }
 0x212   :  { %v795_v54 = vpack.c.bf16 %v734_v18, %v734_v18  ;;  %v1274_v6 = vunpack.c.l.bf16 %v1242_v35  ;;  %v1016_v18 = vperm.slane %v3874_v55, %v3825_v10  ;;  %v1025_v55 = vperm.slane %v3868_v34, %v3825_v10 }
 0x214   :  { %v1147_v16 = vunpack.c.l.bf16 %v795_v54  ;;  %v1306_v0 = vmul.f32 0.010009766, %v1274_v6 }
 0x216   :  { %v1211_v59 = vadd.f32 %v1179_v47, %v1147_v16  ;;  %v1402_v13 = vmax.f32 %v1274_v6, %v1306_v0  ;;  %v1184_v6 = vunpack.c.l.bf16 %v1016_v18 }
 0x218   :  { %v1243_v51 = vpack.c.bf16 %v1211_v59, %v1211_v59 }
 0x219   :  { %v737_v44 = vpop.f32.mrf.mxu0 }
 0x21a   :  { %v1275_v2 = vunpack.c.l.bf16 %v1243_v51  ;;  %v796_v22 = vpack.c.bf16 %v737_v44, %v737_v44 }
 0x21c   :  { %v1148_v52 = vunpack.c.l.bf16 %v796_v22  ;;  %v1307_v31 = vmul.f32 0.010009766, %v1275_v2 }
 0x21e   :  { %v1212_v11 = vadd.f32 %v1180_v56, %v1148_v52  ;;  %v1403_v61 = vmax.f32 %v1275_v2, %v1307_v31 }
 0x220   :  { %v1428_v5 = vpack.c.bf16 %v1403_v61, %v1402_v13  ;;  %v1244_v60 = vpack.c.bf16 %v1212_v11, %v1212_v11 }
 0x221   :  { %v739_v28 = vpop.f32.mrf.mxu0 }
 0x222   :  { %v797_v15 = vpack.c.bf16 %v739_v28, %v739_v28  ;;  %v1276_v21 = vunpack.c.l.bf16 %v1244_v60 }
 0x224   :  { %v1149_v20 = vunpack.c.l.bf16 %v797_v15  ;;  %v1308_v49 = vmul.f32 0.010009766, %v1276_v21 }
 0x226   :  { %v1213_v24 = vadd.f32 %v1181_v19, %v1149_v20  ;;  %v1404_v37 = vmax.f32 %v1276_v21, %v1308_v49  ;;  %v1047_v20 = vpop.permute.xlu0 %1046  ;;  %v1038_v21 = vpop.permute.xlu2 %1037 }
 0x228   :  { %v1245_v29 = vpack.c.bf16 %v1213_v24, %v1213_v24  ;;  %v1052_v24 = vperm.slane %v1047_v20, %v3825_v10 }
 0x229   :  { %v742_v43 = vpop.f32.mrf.mxu0 }
 0x22a   :  { %v1277_v53 = vunpack.c.l.bf16 %v1245_v29  ;;  %v798_v32 = vpack.c.bf16 %v742_v43, %v742_v43 }
 0x22c   :  { %v1150_v9 = vunpack.c.l.bf16 %v798_v32  ;;  %v1309_v39 = vmul.f32 0.010009766, %v1277_v53  ;;  %v1188_v32 = vunpack.c.l.bf16 %v1052_v24 }
 0x22e   :  { %v1214_v12 = vadd.f32 %v1182_v36, %v1150_v9  ;;  %v1405_v23 = vmax.f32 %v1277_v53, %v1309_v39  ;;  %v2864_v9 = vld [vmem:[%s4393_s7] sm:$0xf]  ;;  %v3007_v39 = vld [vmem:[%s4393_s7 + $0x4] sm:$0xf0] }
 0x230   :  { %v1429_v46 = vpack.c.bf16 %v1405_v23, %v1404_v37  ;;  %v1246_v4 = vpack.c.bf16 %v1214_v12, %v1214_v12  ;;  %v1056_v12 = vpop.permute.xlu1 %1055  ;;  %v2865_v23 = vor.u32 %v3007_v39, %v2864_v9  ;;  %v3032_v9 = vld [vmem:[%s4393_s7 + $0xd4] sm:$0xf]  ;;  %v2970_v39 = vld [vmem:[%s4393_s7 + $0xd8] sm:$0xf0] }
 0x231   :  { %v744_v62 = vpop.f32.mrf.mxu0 }
 0x232   :  { %v799_v57 = vpack.c.bf16 %v744_v62, %v744_v62  ;;  %1630 = vmatpush.bf16.msra.mxu1 %v1429_v46  ;;  %3046 = vmatpush.bf16.msrb.mxu3 %v1429_v46  ;;  %v1278_v45 = vunpack.c.l.bf16 %v1246_v4 }
 0x234   :  { %v1151_v40 = vunpack.c.l.bf16 %v799_v57  ;;  %v1310_v38 = vmul.f32 0.010009766, %v1278_v45 }
 0x236   :  { %v1215_v42 = vadd.f32 %v1183_v30, %v1151_v40  ;;  %1631 = vmatpush.bf16.msra.mxu1 %v1428_v5  ;;  %3047 = vmatpush.bf16.msrb.mxu3 %v1428_v5  ;;  %v1406_v44 = vmax.f32 %v1278_v45, %v1310_v38 }
 0x238   :  { %v1247_v35 = vpack.c.bf16 %v1215_v42, %v1215_v42 }
 0x239   :  { %v747_v54 = vpop.f32.mrf.mxu0 }
 0x23a   :  { %v1279_v47 = vunpack.c.l.bf16 %v1247_v35  ;;  %v800_v16 = vpack.c.bf16 %v747_v54, %v747_v54  ;;  %1632 = vmatpush.bf16.msra.mxu1 %v1427_v63  ;;  %3048 = vmatpush.bf16.msrb.mxu3 %v1427_v63  ;;  %v1185_v63 = vunpack.c.l.bf16 %v1025_v55  ;;  %v3035_v55 = vld [vmem:[%s4393_s7 + $0xe4] sm:$0xf0] }
 0x23c   :  { %v1152_v59 = vunpack.c.l.bf16 %v800_v16  ;;  %v1311_v1 = vmul.f32 0.010009766, %v1279_v47 }
 0x23e   :  { %v1216_v51 = vadd.f32 %v1184_v6, %v1152_v59  ;;  %1633 = vmatpush.bf16.msra.mxu1 %v3932_v50  ;;  %3049 = vmatpush.bf16.msrb.mxu3 %v3932_v50  ;;  %v1407_v2 = vmax.f32 %v1279_v47, %v1311_v1  ;;  %v2872_v59 = vld [vmem:[%s4393_s7 + $0x10] sm:$0xf]  ;;  %v3009_v1 = vld [vmem:[%s4393_s7 + $0x14] sm:$0xf0] }
 0x240   :  { %v3955_v22 = vpack.c.bf16 %v1407_v2, %v1406_v44  ;;  %v1248_v56 = vpack.c.bf16 %v1216_v51, %v1216_v51  ;;  %v2976_v2 = vld [vmem:[%s4393_s7 + $0xe0] sm:$0xf] }
 0x241   :  { %v749_v0 = vpop.f32.mrf.mxu0 }
 0x242   :  { %v801_v52 = vpack.c.bf16 %v749_v0, %v749_v0  ;;  %1634 = vmatpush.bf16.msra.mxu1 %v3917_v27  ;;  %3050 = vmatpush.bf16.msrb.mxu3 %v3917_v27  ;;  %v1280_v11 = vunpack.c.l.bf16 %v1248_v56  ;;  %v3031_v27 = vld [vmem:[%s4393_s7 + $0xc4] sm:$0xf0]  ;;  %v2873_v56 = vor.u32 %v3009_v1, %v2872_v59 }
 0x243   :  { %v2961_v60 = vor.u32 %v3031_v27, %v2960_v17  ;;  %v3019_v59 = vld [vmem:[%s4393_s7 + $0x64] sm:$0xf0] }
 0x244   :  { %v1153_v31 = vunpack.c.l.bf16 %v801_v52  ;;  %v1312_v5 = vmul.f32 0.010009766, %v1280_v11 }
 0x246   :  { %v1217_v13 = vadd.f32 %v1185_v63, %v1153_v31  ;;  %1635 = vmatpush.bf16.msra.mxu1 %v3898_v3  ;;  %3051 = vmatpush.bf16.msrb.mxu3 %v3898_v3  ;;  %v1408_v3 = vmax.f32 %v1280_v11, %v1312_v5  ;;  %v2977_v31 = vor.u32 %v3035_v55, %v2976_v2  ;;  %v2880_v5 = vld [vmem:[%s4393_s7 + $0x20] sm:$0xf] }
 0x248   :  { %v1249_v50 = vpack.c.bf16 %v1217_v13, %v1217_v13 }
 0x249   :  { %v752_v61 = vpop.f32.mrf.mxu0 }
 0x24a   :  { %v1281_v34 = vunpack.c.l.bf16 %v1249_v50  ;;  %1636 = vmatpush.bf16.msra.mxu1 %v3885_v14  ;;  %3052 = vmatpush.bf16.msrb.mxu3 %v3885_v14  ;;  %v802_v43 = vpack.c.bf16 %v752_v61, %v752_v61 }
 0x24c   :  { %v1313_v28 = vmul.f32 0.010009766, %v1281_v34  ;;  %v1154_v46 = vunpack.c.l.bf16 %v802_v43  ;;  %v2962_v43 = vld [vmem:[%s4393_s7 + $0xc8] sm:$0xf0] }
 0x24e   :  { %1637 = vmatpush.bf16.msra.mxu1 %v3864_v41  ;;  %3053 = vmatpush.bf16.msrb.mxu3 %v3864_v41  ;;  %v1409_v15 = vmax.f32 %v1281_v34, %v1313_v28  ;;  %v1043_v41 = vperm.slane %v1038_v21, %v3825_v10  ;;  %v3011_v28 = vld [vmem:[%s4393_s7 + $0x24] sm:$0xf0] }
 0x24f   :  { %v2881_v20 = vor.u32 %v3011_v28, %v2880_v5 }
 0x250   :  { %v3972_v14 = vpack.c.bf16 %v1409_v15, %v1408_v3  ;;  %v1187_v33 = vunpack.c.l.bf16 %v1043_v41  ;;  %v3037_v3 = vld [vmem:[%s4393_s7 + $0xf4] sm:$0xf0]  ;;  %v3006_v15 = vld [vmem:[%s4393_s7 + $0x4] sm:$0xf]  ;;  %v2874_v41 = vld [vmem:[%s4393_s7 + $0x18] sm:$0xf0] }
 0x251   :  { %v754_v19 = vpop.f32.mrf.mxu0  ;;  %1698 = vmatmul.bf16.vlgmr.msrb.gmra.mxu3 %v2961_v60  ;;  %1638 = vmatmul.bf16.vlgmr.msra.gmra.mxu1 %v2865_v23  ;;  %v2984_v60 = vld [vmem:[%s4393_s7 + $0xf0] sm:$0xf]  ;;  %v2973_v23 = vor.u32 %v3032_v9, %v2970_v39 }
 0x252   :  { %3054 = vmatpush.bf16.msra.mxu3 %v3919_v48  ;;  %v803_v25 = vpack.c.bf16 %v754_v19, %v754_v19  ;;  %v2968_v48 = vld [vmem:[%s4393_s7 + $0xd0] sm:$0xf]  ;;  %v2866_v19 = vld [vmem:[%s4393_s7 + $0x8] sm:$0xf0]  ;;  %v2985_v21 = vor.u32 %v3037_v3, %v2984_v60  ;;  %v3018_v60 = vld [vmem:[%s4393_s7 + $0x64] sm:$0xf] }
 0x253   :  { %v2869_v24 = vor.u32 %v3006_v15, %v2866_v19  ;;  %v2914_v3 = vld [vmem:[%s4393_s7 + $0x68] sm:$0xf0] }
 0x254   :  { %v1155_v49 = vunpack.c.l.bf16 %v803_v25  ;;  %v3013_v25 = vld [vmem:[%s4393_s7 + $0x34] sm:$0xf0] }
 0x256   :  { %3055 = vmatpush.bf16.msra.mxu3 %v3924_v8  ;;  %v3033_v8 = vld [vmem:[%s4393_s7 + $0xd4] sm:$0xf0]  ;;  %v1219_v4 = vadd.f32 %v1187_v33, %v1155_v49  ;;  %v3010_v49 = vld [vmem:[%s4393_s7 + $0x24] sm:$0xf]  ;;  %v2904_v33 = vld [vmem:[%s4393_s7 + $0x50] sm:$0xf] }
 0x257   :  { %v2969_v37 = vor.u32 %v3033_v8, %v2968_v48 }
 0x258   :  { %v1251_v18 = vpack.c.bf16 %v1219_v4, %v1219_v4  ;;  %v2978_v4 = vld [vmem:[%s4393_s7 + $0xe8] sm:$0xf0] }
 0x259   :  { %v757_v29 = vpop.f32.mrf.mxu0 }
 0x25a   :  { %3056 = vmatpush.bf16.msra.mxu3 %v3927_v58  ;;  %v804_v53 = vpack.c.bf16 %v757_v29, %v757_v29  ;;  %v1034_v58 = vperm.slane %v3879_v7, %v3825_v10  ;;  %v1061_v7 = vperm.slane %v1056_v12, %v3825_v10  ;;  %v1283_v38 = vunpack.c.l.bf16 %v1251_v18  ;;  %v3008_v29 = vld [vmem:[%s4393_s7 + $0x14] sm:$0xf]  ;;  %v3014_v18 = vld [vmem:[%s4393_s7 + $0x44] sm:$0xf] }
 0x25b   :  { %v2877_v48 = vor.u32 %v3008_v29, %v2874_v41 }
 0x25c   :  { %v1156_v36 = vunpack.c.l.bf16 %v804_v53  ;;  %v1186_v62 = vunpack.c.l.bf16 %v1034_v58  ;;  %v1189_v42 = vunpack.c.l.bf16 %v1061_v7  ;;  %v1315_v63 = vmul.f32 0.010009766, %v1283_v38  ;;  %v2896_v58 = vld [vmem:[%s4393_s7 + $0x40] sm:$0xf]  ;;  %v3034_v7 = vld [vmem:[%s4393_s7 + $0xe4] sm:$0xf] }
 0x25e   :  { %3057 = vmatpush.bf16.msra.mxu3 %v3934_v26  ;;  %v1220_v26 = vadd.f32 %v1188_v32, %v1156_v36  ;;  %v1218_v30 = vadd.f32 %v1186_v62, %v1154_v46  ;;  %v1411_v34 = vmax.f32 %v1283_v38, %v1315_v63  ;;  %v3015_v32 = vld [vmem:[%s4393_s7 + $0x44] sm:$0xf0]  ;;  %v2882_v36 = vld [vmem:[%s4393_s7 + $0x28] sm:$0xf0]  ;;  %v3017_v46 = vld [vmem:[%s4393_s7 + $0x54] sm:$0xf0] }
 0x25f   :  { %v2897_v12 = vor.u32 %v3015_v32, %v2896_v58  ;;  %v2890_v62 = vld [vmem:[%s4393_s7 + $0x38] sm:$0xf0]  ;;  %v2920_v63 = vld [vmem:[%s4393_s7 + $0x70] sm:$0xf] }
 0x260   :  { %v1252_v40 = vpack.c.bf16 %v1220_v26, %v1220_v26  ;;  %v1250_v54 = vpack.c.bf16 %v1218_v30, %v1218_v30  ;;  %v3012_v26 = vld [vmem:[%s4393_s7 + $0x34] sm:$0xf] }
 0x261   :  { %v759_v57 = vpop.f32.mrf.mxu0  ;;  %1703 = vmatmul.bf16.gmra.mxu3 %v2969_v37  ;;  %1643 = vmatmul.bf16.gmra.mxu1 %v2873_v56  ;;  %v2885_v37 = vor.u32 %v3010_v49, %v2882_v36  ;;  %v2893_v30 = vor.u32 %v3012_v26, %v2890_v62  ;;  %v3016_v56 = vld [vmem:[%s4393_s7 + $0x54] sm:$0xf]  ;;  %v2936_v49 = vld [vmem:[%s4393_s7 + $0x90] sm:$0xf]  ;;  %v3025_v36 = vld [vmem:[%s4393_s7 + $0x94] sm:$0xf0] }
 0x262   :  { %v805_v45 = vpack.c.bf16 %v759_v57, %v759_v57  ;;  %v1284_v47 = vunpack.c.l.bf16 %v1252_v40  ;;  %v1282_v51 = vunpack.c.l.bf16 %v1250_v54  ;;  %v2905_v57 = vor.u32 %v3017_v46, %v2904_v33  ;;  %v3036_v54 = vld [vmem:[%s4393_s7 + $0xf4] sm:$0xf] }
 0x263   :  { %v2981_v40 = vor.u32 %v3034_v7, %v2978_v4  ;;  %v3022_v7 = vld [vmem:[%s4393_s7 + $0x84] sm:$0xf]  ;;  %v2930_v4 = vld [vmem:[%s4393_s7 + $0x88] sm:$0xf0] }
 0x264   :  { %v1157_v35 = vunpack.c.l.bf16 %v805_v45  ;;  %v1316_v0 = vmul.f32 0.010009766, %v1284_v47  ;;  %v1314_v50 = vmul.f32 0.010009766, %v1282_v51  ;;  %v4082_v45 = vpop.permute.xlu0 %1874 }
 0x266   :  { %v1221_v16 = vadd.f32 %v1189_v42, %v1157_v35  ;;  %v1412_v11 = vmax.f32 %v1284_v47, %v1316_v0  ;;  %v1410_v17 = vmax.f32 %v1282_v51, %v1314_v50  ;;  %v4084_v42 = vpop.permute.xlu1 %1883  ;;  %v2898_v35 = vld [vmem:[%s4393_s7 + $0x48] sm:$0xf0]  ;;  %v2986_v47 = vld [vmem:[%s4393_s7 + $0xf8] sm:$0xf0] }
 0x267   :  { %v2901_v1 = vor.u32 %v3014_v18, %v2898_v35  ;;  %v2989_v51 = vor.u32 %v3036_v54, %v2986_v47  ;;  %v2944_v18 = vld [vmem:[%s4393_s7 + $0xa0] sm:$0xf]  ;;  %v3027_v35 = vld [vmem:[%s4393_s7 + $0xa4] sm:$0xf0] }
 0x268   :  { %v1253_v6 = vpack.c.bf16 %v1221_v16, %v1221_v16  ;;  %v1432_v27 = vpack.c.bf16 %v1411_v34, %v1410_v17  ;;  %v4098_v16 = vpop.permute.xlu2 %1892  ;;  %v2945_v54 = vor.u32 %v3027_v35, %v2944_v18 }
 0x26a   :  { %v1285_v44 = vunpack.c.l.bf16 %v1253_v6  ;;  %v2912_v6 = vld [vmem:[%s4393_s7 + $0x60] sm:$0xf] }
 0x26c   :  { %v1317_v52 = vmul.f32 0.010009766, %v1285_v44  ;;  %v4100_v38 = vpop.permute.xlu0 %1901 }
 0x26e   :  { %v1413_v13 = vmax.f32 %v1285_v44, %v1317_v52  ;;  %v2913_v44 = vor.u32 %v3019_v59, %v2912_v6  ;;  %v4108_v2 = vpop.permute.xlu1 %1910  ;;  %v2906_v52 = vld [vmem:[%s4393_s7 + $0x58] sm:$0xf0] }
 0x270   :  { %v1433_v61 = vpack.c.bf16 %v1413_v13, %v1412_v11  ;;  %v4110_v55 = vpop.permute.xlu2 %1919  ;;  %v2909_v13 = vor.u32 %v3016_v56, %v2906_v52 }
 0x271   :  { %1708 = vmatmul.bf16.gmra.mxu3 %v2977_v31  ;;  %1648 = vmatmul.bf16.gmra.mxu1 %v2881_v20  ;;  %v3021_v31 = vld [vmem:[%s4393_s7 + $0x74] sm:$0xf0]  ;;  %v2928_v20 = vld [vmem:[%s4393_s7 + $0x80] sm:$0xf] }
 0x272   :  { %1723 = vmatpush.bf16.msra.mxu2 %v1433_v61  ;;  %3058 = vmatpush.bf16.msra.mxu3 %v1433_v61  ;;  %v2921_v50 = vor.u32 %v3021_v31, %v2920_v63 }
 0x274   :  { %v4112_v0 = vpop.permute.xlu0 %1928 }
 0x276   :  { %1724 = vmatpush.bf16.msra.mxu2 %v1432_v27  ;;  %3059 = vmatpush.bf16.msra.mxu3 %v1432_v27  ;;  %v4126_v11 = vpop.permute.xlu1 %1937 }
 0x278   :  { %v4128_v61 = vpop.permute.xlu2 %1946 }
 0x27a   :  { %1725 = vmatpush.bf16.msra.mxu2 %v3972_v14  ;;  %3060 = vmatpush.bf16.msra.mxu3 %v3972_v14  ;;  %v2888_v14 = vld [vmem:[%s4393_s7 + $0x30] sm:$0xf] }
 0x27b   :  { %v2889_v53 = vor.u32 %v3013_v25, %v2888_v14 }
 0x27c   :  { %v4130_v34 = vpop.permute.xlu0 %1955 }
 0x27e   :  { %1726 = vmatpush.bf16.msra.mxu2 %v3955_v22  ;;  %3061 = vmatpush.bf16.msra.mxu3 %v3955_v22  ;;  %v3030_v22 = vld [vmem:[%s4393_s7 + $0xc4] sm:$0xf]  ;;  %v4134_v27 = vpop.permute.xlu1 %1964 }
 0x27f   :  { %v2965_v8 = vor.u32 %v3030_v22, %v2962_v43 }
 0x280   :  { %v4136_v5 = vpop.permute.xlu2 %1973 }
 0x281   :  { %1713 = vmatmul.bf16.gmra.mxu3 %v2985_v21  ;;  %1727 = vmatmul.bf16.vlgmr.msra.gmra.mxu2 %v2869_v24  ;;  %v3023_v21 = vld [vmem:[%s4393_s7 + $0x84] sm:$0xf0]  ;;  %v2917_v24 = vor.u32 %v3018_v60, %v2914_v3  ;;  %v3024_v60 = vld [vmem:[%s4393_s7 + $0x94] sm:$0xf]  ;;  %v2938_v3 = vld [vmem:[%s4393_s7 + $0x98] sm:$0xf0] }
 0x282   :  { %1653 = vmatmul.bf16.gmra.mxu1 %v2889_v53  ;;  %v2929_v14 = vor.u32 %v3023_v21, %v2928_v20  ;;  %v3020_v53 = vld [vmem:[%s4393_s7 + $0x74] sm:$0xf] }
 0x284   :  { %v4138_v28 = vpop.permute.xlu0 %1982 }
 0x286   :  { %v4154_v25 = vpop.permute.xlu1 %1991 }
 0x288   :  { %v4156_v29 = vpop.permute.xlu2 %2000 }
 0x28c   :  { %v4158_v41 = vpop.permute.xlu0 %2009 }
 0x290   :  { %v4180_v9 = vpop.permute.xlu2 %2027 }
 0x291   :  { %1732 = vmatmul.bf16.gmra.mxu2 %v2877_v48  ;;  %1787 = vmatmul.bf16.vlgmr.msra.gmra.mxu3 %v2965_v8  ;;  %v2922_v48 = vld [vmem:[%s4393_s7 + $0x78] sm:$0xf0]  ;;  %v4168_v8 = vpop.permute.xlu1 %2018 }
 0x292   :  { %1658 = vmatmul.bf16.gmra.mxu1 %v2897_v12  ;;  %v2925_v12 = vor.u32 %v3020_v53, %v2922_v48 }
 0x294   :  { %v4182_v39 = vpop.permute.xlu0 %2036 }
 0x298   :  { %v4190_v26 = vpop.permute.xlu2 %2054 }
 0x299   :  { %v4188_v46 = vpop.permute.xlu1 %2045 }
 0x29c   :  { %v4192_v62 = vpop.permute.xlu0 %2063 }
 0x2a0   :  { %v4212_v6 = vpop.permute.xlu2 %2081 }
 0x2a1   :  { %1737 = vmatmul.bf16.gmra.mxu2 %v2885_v37  ;;  %1792 = vmatmul.bf16.gmra.mxu3 %v2973_v23  ;;  %v2937_v37 = vor.u32 %v3025_v36, %v2936_v49  ;;  %v4210_v47 = vpop.permute.xlu1 %2072  ;;  %4398 = vst [vmem:[#allocation6_spill] sm:$0xff] %v4212_v6  ;;  %v2941_v49 = vor.u32 %v3024_v60, %v2938_v3  ;;  %v2952_v36 = vld [vmem:[%s4393_s7 + $0xb0] sm:$0xf] }
 0x2a2   :  { %1663 = vmatmul.bf16.gmra.mxu1 %v2905_v57 }
 0x2a4   :  { %v2091_v59 = vpop.permute.xlu0 %2090 }
 0x2a8   :  { %v4228_v20 = vpop.permute.xlu2 %2108 }
 0x2ac   :  { %v4230_v21 = vpop.permute.xlu0 %2117 }
 0x2b1   :  { %1742 = vmatmul.bf16.gmra.mxu2 %v2893_v30  ;;  %1797 = vmatmul.bf16.gmra.mxu3 %v2981_v40  ;;  %v2933_v30 = vor.u32 %v3022_v7, %v2930_v4 }
 0x2b2   :  { %1668 = vmatmul.bf16.gmra.mxu1 %v2913_v44  ;;  %v1880_v44 = vperm.slane %v4082_v45, %v3825_v10 }
 0x2b4   :  { %v2192_v31 = vunpack.c.l.bf16 %v1880_v44  ;;  %v2096_v44 = vperm.slane %v2091_v59, %v3825_v10 }
 0x2c1   :  { %1747 = vmatmul.bf16.gmra.mxu2 %v2901_v1  ;;  %1802 = vmatmul.bf16.gmra.mxu3 %v2989_v51 }
 0x2c2   :  { %1673 = vmatmul.bf16.gmra.mxu1 %v2921_v50 }
 0x2ce   :  { %v1639_v19 = vpop.f32.mrf.mxu1 }
 0x2d1   :  { %1752 = vmatmul.bf16.gmra.mxu2 %v2909_v13  ;;  %v4220_v13 = vpop.permute.xlu1 %2099 }
 0x2d2   :  { %1678 = vmatmul.bf16.gmra.mxu1 %v2929_v14  ;;  %v1889_v14 = vperm.slane %v4084_v42, %v3825_v10 }
 0x2d4   :  { %v4132_v17 = vpop.f32.mrf.mxu3 }
 0x2d6   :  { %v1641_v43 = vpop.f32.mrf.mxu1 }
 0x2dc   :  { %v4146_v15 = vpop.f32.mrf.mxu3 }
 0x2de   :  { %v4172_v32 = vpop.f32.mrf.mxu1 }
 0x2e1   :  { %1757 = vmatmul.bf16.gmra.mxu2 %v2917_v24 }
 0x2e2   :  { %1683 = vmatmul.bf16.gmra.mxu1 %v2937_v37 }
 0x2e4   :  { %v4160_v22 = vpop.f32.mrf.mxu3 }
 0x2e6   :  { %v4186_v33 = vpop.f32.mrf.mxu1 }
 0x2ec   :  { %v4170_v58 = vpop.f32.mrf.mxu3 }
 0x2ee   :  { %v4202_v40 = vpop.f32.mrf.mxu1 }
 0x2f1   :  { %1762 = vmatmul.bf16.gmra.mxu2 %v2925_v12  ;;  %v3029_v12 = vld [vmem:[%s4393_s7 + $0xb4] sm:$0xf0] }
 0x2f2   :  { %1688 = vmatmul.bf16.gmra.mxu1 %v2945_v54  ;;  %v2953_v37 = vor.u32 %v3029_v12, %v2952_v36  ;;  %v2216_v36 = vunpack.c.l.bf16 %v2096_v44 }
 0x2f4   :  { %v4184_v23 = vpop.f32.mrf.mxu3 }
 0x2f6   :  { %v4218_v63 = vpop.f32.mrf.mxu1 }
 0x2fc   :  { %v4200_v57 = vpop.f32.mrf.mxu3 }
 0x2ff   :  { %v4242_v42 = vpop.f32.mrf.mxu1 }
 0x301   :  { %1767 = vmatmul.bf16.gmra.mxu2 %v2933_v30  ;;  %v2193_v30 = vunpack.c.l.bf16 %v1889_v14 }
 0x302   :  { %1693 = vmatmul.bf16.gmra.mxu1 %v2953_v37 }
 0x304   :  { %v4214_v1 = vpop.f32.mrf.mxu3  ;;  %v1728_v51 = vpop.f32.mrf.mxu2 }
 0x305   :  { %v1729_v56 = vadd.f32 %v1728_v51, %v1639_v19  ;;  %v1898_v51 = vperm.slane %v4098_v16, %v3825_v10 }
 0x307   :  { %v1808_v52 = vpack.c.bf16 %v1729_v56, %v1729_v56 }
 0x309   :  { %v2160_v50 = vunpack.c.l.bf16 %v1808_v52 }
 0x30b   :  { %v2224_v45 = vadd.f32 %v2192_v31, %v2160_v50 }
 0x30c   :  { %v4232_v19 = vpop.f32.mrf.mxu3  ;;  %v1730_v24 = vpop.f32.mrf.mxu2 }
 0x30d   :  { %v2256_v53 = vpack.c.bf16 %v2224_v45, %v2224_v45  ;;  %v1731_v48 = vadd.f32 %v1730_v24, %v1641_v43  ;;  %v4244_v43 = vpop.permute.xlu1 %2126  ;;  %v4251_v45 = vpop.permute.xlu2 %2135 }
 0x30e   :  { %v4253_v24 = vpop.permute.xlu0 %2144 }
 0x30f   :  { %v2288_v7 = vunpack.c.l.bf16 %v2256_v53  ;;  %v1809_v4 = vpack.c.bf16 %v1731_v48, %v1731_v48 }
 0x311   :  { %v2320_v18 = vmul.f32 0.010009766, %v2288_v7  ;;  %v2161_v35 = vunpack.c.l.bf16 %v1809_v4  ;;  %1772 = vmatmul.bf16.gmra.mxu2 %v2941_v49  ;;  %v2194_v49 = vunpack.c.l.bf16 %v1898_v51 }
 0x313   :  { %v2225_v54 = vadd.f32 %v2193_v30, %v2161_v35  ;;  %v2416_v31 = vmax.f32 %v2288_v7, %v2320_v18  ;;  %v3026_v7 = vld [vmem:[%s4393_s7 + $0xa4] sm:$0xf]  ;;  %v4263_v18 = vpop.f32.mrf.mxu1  ;;  %v1907_v35 = vperm.slane %v4100_v38, %v3825_v10 }
 0x314   :  { %v1733_v56 = vpop.f32.mrf.mxu2  ;;  %v1788_v52 = vpop.f32.mrf.mxu3 }
 0x315   :  { %v2257_v50 = vpack.c.bf16 %v2225_v54, %v2225_v54  ;;  %v1734_v60 = vadd.f32 %v1733_v56, %v4172_v32  ;;  %v1789_v3 = vadd.f32 %v1788_v52, %v4132_v17  ;;  %v2448_v16 = vpack.c.bf16 %v2416_v31, %v2416_v31  ;;  %v2946_v17 = vld [vmem:[%s4393_s7 + $0xa8] sm:$0xf0]  ;;  %v2547_v38 = vpop.permute.xlu2 %2546 }
 0x316   :  { %v2949_v44 = vor.u32 %v3026_v7, %v2946_v17 }
 0x317   :  { %v2289_v14 = vunpack.c.l.bf16 %v2257_v50  ;;  %v1810_v53 = vpack.c.bf16 %v1734_v60, %v1734_v60  ;;  %v1832_v48 = vpack.c.bf16 %v1789_v3, %v1789_v3  ;;  %v2512_v56 = vunpack.c.l.bf16 %v2448_v16  ;;  %v4270_v3 = vpop.permute.xlu1 %2153 }
 0x318   :  { %v2105_v60 = vperm.slane %v4220_v13, %v3825_v10 }
 0x319   :  { %v2321_v12 = vmul.f32 0.010009766, %v2289_v14  ;;  %v2162_v59 = vunpack.c.l.bf16 %v1810_v53  ;;  %v2184_v37 = vunpack.c.l.bf16 %v1832_v48 }
 0x31b   :  { %v2417_v32 = vmax.f32 %v2289_v14, %v2321_v12  ;;  %v2226_v4 = vadd.f32 %v2194_v49, %v2162_v59  ;;  %v4261_v30 = vadd.f32 %v2216_v36, %v2184_v37  ;;  %v2195_v36 = vunpack.c.l.bf16 %v1907_v35  ;;  %v2552_v12 = vpop.permute.xlu0 %2551 }
 0x31c   :  { %v1735_v54 = vpop.f32.mrf.mxu2  ;;  %v1790_v51 = vpop.f32.mrf.mxu3  ;;  %v2704_v37 = vmul.f32 %v2547_v38, %v2512_v56  ;;  %v1916_v35 = vperm.slane %v4108_v2, %v3825_v10 }
 0x31d   :  { %v2449_v52 = vpack.c.bf16 %v2417_v32, %v2417_v32  ;;  %v2258_v31 = vpack.c.bf16 %v2226_v4, %v2226_v4  ;;  %v1736_v50 = vadd.f32 %v1735_v54, %v4186_v33  ;;  %v1791_v14 = vadd.f32 %v1790_v51, %v4146_v15 }
 0x31e   :  { %v2217_v33 = vunpack.c.l.bf16 %v2105_v60  ;;  %v2196_v38 = vunpack.c.l.bf16 %v1916_v35 }
 0x31f   :  { %v2513_v53 = vunpack.c.l.bf16 %v2449_v52  ;;  %v2290_v48 = vunpack.c.l.bf16 %v2258_v31  ;;  %v1811_v49 = vpack.c.bf16 %v1736_v50, %v1736_v50  ;;  %v1833_v59 = vpack.c.bf16 %v1791_v14, %v1791_v14  ;;  %v4278_v50 = vpop.f32.mrf.mxu1 }
 0x321   :  { %v2705_v16 = vmul.f32 %v2552_v12, %v2513_v53  ;;  %v2322_v7 = vmul.f32 0.010009766, %v2290_v48  ;;  %v2163_v17 = vunpack.c.l.bf16 %v1811_v49  ;;  %1777 = vmatmul.bf16.gmra.mxu2 %v2949_v44  ;;  %v2185_v32 = vunpack.c.l.bf16 %v1833_v59  ;;  %v2557_v49 = vpop.permute.xlu1 %2556 }
 0x322   :  { %v2114_v44 = vperm.slane %v4228_v20, %v3825_v10 }
 0x323   :  { %v2736_v4 = vadd.f32 %v2705_v16, %v2704_v37  ;;  %v2418_v13 = vmax.f32 %v2290_v48, %v2322_v7  ;;  %v2227_v54 = vadd.f32 %v2195_v36, %v2163_v17  ;;  %v4273_v6 = vadd.f32 %v2217_v33, %v2185_v32  ;;  %v2954_v37 = vld [vmem:[%s4393_s7 + $0xb8] sm:$0xf0] }
 0x324   :  { %v1738_v15 = vpop.f32.mrf.mxu2  ;;  %v1793_v51 = vpop.f32.mrf.mxu3  ;;  %v2218_v20 = vunpack.c.l.bf16 %v2114_v44  ;;  %v1925_v33 = vperm.slane %v4110_v55, %v3825_v10  ;;  %v2123_v32 = vperm.slane %v4230_v21, %v3825_v10 }
 0x325   :  { %v2450_v52 = vpack.c.bf16 %v2418_v13, %v2418_v13  ;;  %v2259_v31 = vpack.c.bf16 %v2227_v54, %v2227_v54  ;;  %v1739_v56 = vadd.f32 %v1738_v15, %v4202_v40  ;;  %v1794_v60 = vadd.f32 %v1793_v51, %v4160_v22  ;;  %v3028_v40 = vld [vmem:[%s4393_s7 + $0xb4] sm:$0xf]  ;;  %s3097_s7 = smov [#allocation3]  }
 0x326   :  { %v2957_v51 = vor.u32 %v3028_v40, %v2954_v37  ;;  %v2197_v55 = vunpack.c.l.bf16 %v1925_v33  ;;  %v2219_v21 = vunpack.c.l.bf16 %v2123_v32  ;;  %v2132_v33 = vperm.slane %v4244_v43, %v3825_v10  ;;  %s2787_s20 = sshll.u32 %s3097_s7, 4  ;;  %s2788_s20 = int_to_ptr.vmem [resolvable:$true] %s2787_s20 }
 0x327   :  { %v2514_v14 = vunpack.c.l.bf16 %v2450_v52  ;;  %v2291_v53 = vunpack.c.l.bf16 %v2259_v31  ;;  %v1812_v48 = vpack.c.bf16 %v1739_v56, %v1739_v56  ;;  %v1834_v36 = vpack.c.bf16 %v1794_v60, %v1794_v60 }
 0x329   :  { %v2706_v12 = vmul.f32 %v2557_v49, %v2514_v14  ;;  %v2323_v59 = vmul.f32 0.010009766, %v2291_v53  ;;  %v2164_v2 = vunpack.c.l.bf16 %v1812_v48  ;;  %v2186_v16 = vunpack.c.l.bf16 %v1834_v36  ;;  %v2562_v48 = vpop.permute.xlu2 %2561 }
 0x32b   :  { %v2737_v22 = vadd.f32 %v2736_v4, %v2706_v12  ;;  %v2419_v7 = vmax.f32 %v2291_v53, %v2323_v59  ;;  %v2228_v17 = vadd.f32 %v2196_v38, %v2164_v2  ;;  %v4293_v13 = vadd.f32 %v2218_v20, %v2186_v16  ;;  %v4297_v53 = vpop.f32.mrf.mxu1 }
 0x32c   :  { %v1740_v54 = vpop.f32.mrf.mxu2  ;;  %v1795_v15 = vpop.f32.mrf.mxu3  ;;  %v1934_v20 = vperm.slane %v4112_v0, %v3825_v10  ;;  %v2220_v0 = vunpack.c.l.bf16 %v2132_v33 }
 0x32d   :  { %v2451_v35 = vpack.c.bf16 %v2419_v7, %v2419_v7  ;;  %v2260_v52 = vpack.c.bf16 %v2228_v17, %v2228_v17  ;;  %v1741_v31 = vadd.f32 %v1740_v54, %v4218_v63  ;;  %v1796_v56 = vadd.f32 %v1795_v15, %v4170_v58 }
 0x32f   :  { %v2515_v4 = vunpack.c.l.bf16 %v2451_v35  ;;  %v2292_v44 = vunpack.c.l.bf16 %v2260_v52  ;;  %v1813_v60 = vpack.c.bf16 %v1741_v31, %v1741_v31  ;;  %v1835_v14 = vpack.c.bf16 %v1796_v56, %v1796_v56 }
 0x330   :  { %v2198_v52 = vunpack.c.l.bf16 %v1934_v20 }
 0x331   :  { %v2707_v49 = vmul.f32 %v2562_v48, %v2515_v4  ;;  %v2324_v36 = vmul.f32 0.010009766, %v2292_v44  ;;  %v2165_v38 = vunpack.c.l.bf16 %v1813_v60  ;;  %v2187_v12 = vunpack.c.l.bf16 %v1835_v14  ;;  %1782 = vmatmul.bf16.gmra.mxu2 %v2957_v51  ;;  %v2567_v51 = vpop.permute.xlu0 %2566 }
 0x333   :  { %v2738_v59 = vadd.f32 %v2737_v22, %v2707_v49  ;;  %v2420_v2 = vmax.f32 %v2292_v44, %v2324_v36  ;;  %v2229_v40 = vadd.f32 %v2197_v55, %v2165_v38  ;;  %v4299_v63 = vadd.f32 %v2219_v21, %v2187_v12  ;;  %v4307_v44 = vpop.f32.mrf.mxu1 }
 0x334   :  { %v1743_v58 = vpop.f32.mrf.mxu2  ;;  %v1798_v37 = vpop.f32.mrf.mxu3  ;;  %v1943_v21 = vperm.slane %v4126_v11, %v3825_v10  ;;  %v2141_v12 = vperm.slane %v4251_v45, %v3825_v10  ;;  %v1952_v45 = vperm.slane %v4128_v61, %v3825_v10 }
 0x335   :  { %v2452_v16 = vpack.c.bf16 %v2420_v2, %v2420_v2  ;;  %v2261_v7 = vpack.c.bf16 %v2229_v40, %v2229_v40  ;;  %v1744_v17 = vadd.f32 %v1743_v58, %v4242_v42  ;;  %v1799_v32 = vadd.f32 %v1798_v37, %v4184_v23  ;;  %v2572_v37 = vpop.permute.xlu1 %2571 }
 0x337   :  { %v2516_v54 = vunpack.c.l.bf16 %v2452_v16  ;;  %v2293_v22 = vunpack.c.l.bf16 %v2261_v7  ;;  %v1814_v15 = vpack.c.bf16 %v1744_v17, %v1744_v17  ;;  %v1836_v35 = vpack.c.bf16 %v1799_v32, %v1799_v32 }
 0x338   :  { %v2199_v16 = vunpack.c.l.bf16 %v1943_v21  ;;  %v2221_v32 = vunpack.c.l.bf16 %v2141_v12 }
 0x339   :  { %v2708_v31 = vmul.f32 %v2567_v51, %v2516_v54  ;;  %v2325_v56 = vmul.f32 0.010009766, %v2293_v22  ;;  %v2166_v4 = vunpack.c.l.bf16 %v1814_v15  ;;  %v2188_v60 = vunpack.c.l.bf16 %v1836_v35 }
 0x33b   :  { %v2739_v14 = vadd.f32 %v2738_v59, %v2708_v31  ;;  %v2421_v42 = vmax.f32 %v2293_v22, %v2325_v56  ;;  %v2230_v55 = vadd.f32 %v2198_v52, %v2166_v4  ;;  %v4309_v48 = vadd.f32 %v2220_v0, %v2188_v60 }
 0x33c   :  { %v1745_v43 = vpop.f32.mrf.mxu2  ;;  %v1800_v23 = vpop.f32.mrf.mxu3 }
 0x33d   :  { %v2453_v49 = vpack.c.bf16 %v2421_v42, %v2421_v42  ;;  %v2262_v36 = vpack.c.bf16 %v2230_v55, %v2230_v55  ;;  %v1746_v38 = vadd.f32 %v1745_v43, %v4263_v18  ;;  %v1801_v2 = vadd.f32 %v1800_v23, %v4200_v57  ;;  %v4317_v18 = vpop.f32.mrf.mxu1  ;;  %v2577_v23 = vpop.permute.xlu2 %2576 }
 0x33e   :  { %v2150_v57 = vperm.slane %v4253_v24, %v3825_v10  ;;  %v2200_v43 = vunpack.c.l.bf16 %v1952_v45 }
 0x33f   :  { %v2517_v40 = vunpack.c.l.bf16 %v2453_v49  ;;  %v2294_v59 = vunpack.c.l.bf16 %v2262_v36  ;;  %v1815_v58 = vpack.c.bf16 %v1746_v38, %v1746_v38  ;;  %v1837_v20 = vpack.c.bf16 %v1801_v2, %v1801_v2 }
 0x340   :  { %v2222_v61 = vunpack.c.l.bf16 %v2150_v57 }
 0x341   :  { %v2709_v7 = vmul.f32 %v2572_v37, %v2517_v40  ;;  %v2326_v17 = vmul.f32 0.010009766, %v2294_v59  ;;  %v2167_v33 = vunpack.c.l.bf16 %v1815_v58  ;;  %v2189_v11 = vunpack.c.l.bf16 %v1837_v20 }
 0x343   :  { %v2740_v54 = vadd.f32 %v2739_v14, %v2709_v7  ;;  %v2422_v22 = vmax.f32 %v2294_v59, %v2326_v17  ;;  %v2231_v15 = vadd.f32 %v2199_v16, %v2167_v33  ;;  %v4323_v51 = vadd.f32 %v2221_v32, %v2189_v11 }
 0x344   :  { %v1748_v35 = vpop.f32.mrf.mxu2  ;;  %v1803_v52 = vpop.f32.mrf.mxu3  ;;  %v2159_v16 = vperm.slane %v4270_v3, %v3825_v10 }
 0x345   :  { %v2454_v31 = vpack.c.bf16 %v2422_v22, %v2422_v22  ;;  %v2263_v56 = vpack.c.bf16 %v2231_v15, %v2231_v15  ;;  %v1749_v4 = vadd.f32 %v1748_v35, %v4278_v50  ;;  %v1804_v0 = vadd.f32 %v1803_v52, %v4214_v1  ;;  %v1669_v17 = vpop.f32.mrf.mxu1 }
 0x346   :  { %v1961_v1 = vperm.slane %v4130_v34, %v3825_v10  ;;  %v2223_v34 = vunpack.c.l.bf16 %v2159_v16  ;;  %v2592_v16 = vpop.permute.xlu2 %2591 }
 0x347   :  { %v2518_v60 = vunpack.c.l.bf16 %v2454_v31  ;;  %v2295_v14 = vunpack.c.l.bf16 %v2263_v56  ;;  %v1816_v42 = vpack.c.bf16 %v1749_v4, %v1749_v4  ;;  %v1838_v55 = vpack.c.bf16 %v1804_v0, %v1804_v0 }
 0x348   :  { %v2201_v15 = vunpack.c.l.bf16 %v1961_v1 }
 0x349   :  { %v2710_v21 = vmul.f32 %v2577_v23, %v2518_v60  ;;  %v2327_v49 = vmul.f32 0.010009766, %v2295_v14  ;;  %v2168_v24 = vunpack.c.l.bf16 %v1816_v42  ;;  %v2190_v36 = vunpack.c.l.bf16 %v1838_v55  ;;  %v2587_v23 = vpop.permute.xlu1 %2586 }
 0x34b   :  { %v2741_v38 = vadd.f32 %v2740_v54, %v2710_v21  ;;  %v2423_v12 = vmax.f32 %v2295_v14, %v2327_v49  ;;  %v2232_v2 = vadd.f32 %v2200_v43, %v2168_v24  ;;  %v4327_v40 = vadd.f32 %v2222_v61, %v2190_v36  ;;  %v2582_v54 = vpop.permute.xlu0 %2581 }
 0x34c   :  { %v1750_v59 = vpop.f32.mrf.mxu2  ;;  %v1805_v50 = vpop.f32.mrf.mxu3 }
 0x34d   :  { %v2455_v58 = vpack.c.bf16 %v2423_v12, %v2423_v12  ;;  %v2264_v37 = vpack.c.bf16 %v2232_v2, %v2232_v2  ;;  %v1751_v20 = vadd.f32 %v1750_v59, %v4297_v53  ;;  %v1806_v7 = vadd.f32 %v1805_v50, %v4232_v19  ;;  %v1671_v61 = vpop.f32.mrf.mxu1 }
 0x34e   :  { %v1970_v19 = vperm.slane %v4134_v27, %v3825_v10  ;;  %v1979_v27 = vperm.slane %v4136_v5, %v3825_v10  ;;  %v1988_v5 = vperm.slane %v4138_v28, %v3825_v10 }
 0x34f   :  { %v2519_v33 = vunpack.c.l.bf16 %v2455_v58  ;;  %v2296_v32 = vunpack.c.l.bf16 %v2264_v37  ;;  %v1817_v11 = vpack.c.bf16 %v1751_v20, %v1751_v20  ;;  %v1839_v22 = vpack.c.bf16 %v1806_v7, %v1806_v7 }
 0x350   :  { %v2202_v21 = vunpack.c.l.bf16 %v1970_v19  ;;  %v2203_v7 = vunpack.c.l.bf16 %v1979_v27 }
 0x351   :  { %v2711_v45 = vmul.f32 %v2582_v54, %v2519_v33  ;;  %v2328_v57 = vmul.f32 0.010009766, %v2296_v32  ;;  %v2169_v35 = vunpack.c.l.bf16 %v1817_v11  ;;  %v2191_v52 = vunpack.c.l.bf16 %v1839_v22 }
 0x353   :  { %v2742_v31 = vadd.f32 %v2741_v38, %v2711_v45  ;;  %v2424_v56 = vmax.f32 %v2296_v32, %v2328_v57  ;;  %v2233_v53 = vadd.f32 %v2201_v15, %v2169_v35  ;;  %v4335_v4 = vadd.f32 %v2223_v34, %v2191_v52 }
 0x354   :  { %v1753_v3 = vpop.f32.mrf.mxu2 }
 0x355   :  { %v2456_v0 = vpack.c.bf16 %v2424_v56, %v2424_v56  ;;  %v2265_v60 = vpack.c.bf16 %v2233_v53, %v2233_v53  ;;  %v1754_v14 = vadd.f32 %v1753_v3, %v4307_v44  ;;  %v1674_v54 = vpop.f32.mrf.mxu1  ;;  %v2597_v53 = vpop.permute.xlu0 %2596  ;;  %v2204_v3 = vunpack.c.l.bf16 %v1988_v5 }
 0x357   :  { %v2520_v42 = vunpack.c.l.bf16 %v2456_v0  ;;  %v2297_v55 = vunpack.c.l.bf16 %v2265_v60  ;;  %v1818_v43 = vpack.c.bf16 %v1754_v14, %v1754_v14 }
 0x359   :  { %v2712_v49 = vmul.f32 %v2587_v23, %v2520_v42  ;;  %v2329_v24 = vmul.f32 0.010009766, %v2297_v55  ;;  %v2170_v36 = vunpack.c.l.bf16 %v1818_v43 }
 0x35b   :  { %v2743_v38 = vadd.f32 %v2742_v31, %v2712_v49  ;;  %v2425_v12 = vmax.f32 %v2297_v55, %v2329_v24  ;;  %v2234_v2 = vadd.f32 %v2202_v21, %v2170_v36  ;;  %v1997_v21 = vperm.slane %v4154_v25, %v3825_v10 }
 0x35c   :  { %v1755_v59 = vpop.f32.mrf.mxu2 }
 0x35d   :  { %v2457_v50 = vpack.c.bf16 %v2425_v12, %v2425_v12  ;;  %v2266_v1 = vpack.c.bf16 %v2234_v2, %v2234_v2  ;;  %v1756_v44 = vadd.f32 %v1755_v59, %v4317_v18  ;;  %v1676_v23 = vpop.f32.mrf.mxu1  ;;  %v2602_v12 = vpop.permute.xlu1 %2601  ;;  %v2205_v2 = vunpack.c.l.bf16 %v1997_v21 }
 0x35f   :  { %v2521_v58 = vunpack.c.l.bf16 %v2457_v50  ;;  %v2298_v37 = vunpack.c.l.bf16 %v2266_v1  ;;  %v1819_v20 = vpack.c.bf16 %v1756_v44, %v1756_v44 }
 0x361   :  { %v2713_v33 = vmul.f32 %v2592_v16, %v2521_v58  ;;  %v2330_v32 = vmul.f32 0.010009766, %v2298_v37  ;;  %v2171_v11 = vunpack.c.l.bf16 %v1819_v20  ;;  %v2006_v20 = vperm.slane %v4156_v29, %v3825_v10 }
 0x363   :  { %v2744_v22 = vadd.f32 %v2743_v38, %v2713_v33  ;;  %v2426_v15 = vmax.f32 %v2298_v37, %v2330_v32  ;;  %v2235_v45 = vadd.f32 %v2203_v7, %v2171_v11 }
 0x364   :  { %v1758_v57 = vpop.f32.mrf.mxu2 }
 0x365   :  { %v2458_v35 = vpack.c.bf16 %v2426_v15, %v2426_v15  ;;  %v2267_v34 = vpack.c.bf16 %v2235_v45, %v2235_v45  ;;  %v1759_v52 = vadd.f32 %v1758_v57, %v1669_v17  ;;  %v1679_v33 = vpop.f32.mrf.mxu1  ;;  %v2206_v15 = vunpack.c.l.bf16 %v2006_v20 }
 0x367   :  { %v2522_v18 = vunpack.c.l.bf16 %v2458_v35  ;;  %v2299_v31 = vunpack.c.l.bf16 %v2267_v34  ;;  %v1820_v56 = vpack.c.bf16 %v1759_v52, %v1759_v52 }
 0x369   :  { %v2714_v19 = vmul.f32 %v2597_v53, %v2522_v18  ;;  %v2331_v0 = vmul.f32 0.010009766, %v2299_v31  ;;  %v2172_v60 = vunpack.c.l.bf16 %v1820_v56 }
 0x36b   :  { %v2745_v14 = vadd.f32 %v2744_v22, %v2714_v19  ;;  %v2427_v42 = vmax.f32 %v2299_v31, %v2331_v0  ;;  %v2236_v55 = vadd.f32 %v2204_v3, %v2172_v60  ;;  %v2607_v22 = vpop.permute.xlu2 %2606  ;;  %v2015_v31 = vperm.slane %v4158_v41, %v3825_v10  ;;  %v2612_v0 = vpop.permute.xlu0 %2611 }
 0x36c   :  { %v1760_v43 = vpop.f32.mrf.mxu2 }
 0x36d   :  { %v2459_v28 = vpack.c.bf16 %v2427_v42, %v2427_v42  ;;  %v2268_v49 = vpack.c.bf16 %v2236_v55, %v2236_v55  ;;  %v1761_v24 = vadd.f32 %v1760_v43, %v1671_v61  ;;  %v1681_v60 = vpop.f32.mrf.mxu1 }
 0x36f   :  { %v2523_v17 = vunpack.c.l.bf16 %v2459_v28  ;;  %v2300_v36 = vunpack.c.l.bf16 %v2268_v49  ;;  %v1821_v38 = vpack.c.bf16 %v1761_v24, %v1761_v24 }
 0x371   :  { %v2715_v59 = vmul.f32 %v2602_v12, %v2523_v17  ;;  %v2332_v27 = vmul.f32 0.010009766, %v2300_v36  ;;  %v2173_v50 = vunpack.c.l.bf16 %v1821_v38  ;;  %v2024_v17 = vperm.slane %v4168_v8, %v3825_v10 }
 0x373   :  { %v2746_v1 = vadd.f32 %v2745_v14, %v2715_v59  ;;  %v2428_v44 = vmax.f32 %v2300_v36, %v2332_v27  ;;  %v2237_v58 = vadd.f32 %v2205_v2, %v2173_v50  ;;  %v2207_v14 = vunpack.c.l.bf16 %v2015_v31  ;;  %v2617_v59 = vpop.permute.xlu1 %2616 }
 0x374   :  { %v1763_v37 = vpop.f32.mrf.mxu2  ;;  %v2208_v27 = vunpack.c.l.bf16 %v2024_v17  ;;  %v2051_v17 = vperm.slane %v4188_v46, %v3825_v10 }
 0x375   :  { %v2460_v16 = vpack.c.bf16 %v2428_v44, %v2428_v44  ;;  %v2269_v25 = vpack.c.bf16 %v2237_v58, %v2237_v58  ;;  %v1764_v7 = vadd.f32 %v1763_v37, %v1674_v54  ;;  %v1684_v58 = vpop.f32.mrf.mxu1 }
 0x377   :  { %v2524_v61 = vunpack.c.l.bf16 %v2460_v16  ;;  %v2301_v32 = vunpack.c.l.bf16 %v2269_v25  ;;  %v1822_v11 = vpack.c.bf16 %v1764_v7, %v1764_v7  ;;  %v2033_v7 = vperm.slane %v4180_v9, %v3825_v10 }
 0x379   :  { %v2716_v45 = vmul.f32 %v2607_v22, %v2524_v61  ;;  %v2333_v57 = vmul.f32 0.010009766, %v2301_v32  ;;  %v2174_v5 = vunpack.c.l.bf16 %v1822_v11 }
 0x37b   :  { %v2747_v35 = vadd.f32 %v2746_v1, %v2716_v45  ;;  %v2429_v34 = vmax.f32 %v2301_v32, %v2333_v57  ;;  %v2238_v52 = vadd.f32 %v2206_v15, %v2174_v5  ;;  %v2622_v15 = vpop.permute.xlu2 %2621  ;;  %v2209_v45 = vunpack.c.l.bf16 %v2033_v7 }
 0x37c   :  { %v1765_v18 = vpop.f32.mrf.mxu2 }
 0x37d   :  { %v2461_v29 = vpack.c.bf16 %v2429_v34, %v2429_v34  ;;  %v2270_v56 = vpack.c.bf16 %v2238_v52, %v2238_v52  ;;  %v1766_v53 = vadd.f32 %v1765_v18, %v1676_v23  ;;  %v1686_v31 = vpop.f32.mrf.mxu1 }
 0x37f   :  { %v2525_v54 = vunpack.c.l.bf16 %v2461_v29  ;;  %v2302_v3 = vunpack.c.l.bf16 %v2270_v56  ;;  %v1823_v19 = vpack.c.bf16 %v1766_v53, %v1766_v53  ;;  %v2042_v56 = vperm.slane %v4182_v39, %v3825_v10 }
 0x381   :  { %v2717_v42 = vmul.f32 %v2612_v0, %v2525_v54  ;;  %v2334_v55 = vmul.f32 0.010009766, %v2302_v3  ;;  %v2175_v43 = vunpack.c.l.bf16 %v1823_v19 }
 0x383   :  { %v2748_v21 = vadd.f32 %v2747_v35, %v2717_v42  ;;  %v2430_v28 = vmax.f32 %v2302_v3, %v2334_v55  ;;  %v2239_v49 = vadd.f32 %v2207_v14, %v2175_v43  ;;  %v2210_v14 = vunpack.c.l.bf16 %v2042_v56 }
 0x384   :  { %v1768_v24 = vpop.f32.mrf.mxu2 }
 0x385   :  { %v2462_v41 = vpack.c.bf16 %v2430_v28, %v2430_v28  ;;  %v2271_v36 = vpack.c.bf16 %v2239_v49, %v2239_v49  ;;  %v1769_v38 = vadd.f32 %v1768_v24, %v1679_v33 }
 0x387   :  { %v2526_v23 = vunpack.c.l.bf16 %v2462_v41  ;;  %v2303_v12 = vunpack.c.l.bf16 %v2271_v36  ;;  %v1824_v2 = vpack.c.bf16 %v1769_v38, %v1769_v38  ;;  %v1689_v38 = vpop.f32.mrf.mxu1 }
 0x389   :  { %v2718_v50 = vmul.f32 %v2617_v59, %v2526_v23  ;;  %v2335_v1 = vmul.f32 0.010009766, %v2303_v12  ;;  %v2176_v44 = vunpack.c.l.bf16 %v1824_v2  ;;  %v2632_v59 = vpop.permute.xlu1 %2631 }
 0x38b   :  { %v2749_v37 = vadd.f32 %v2748_v21, %v2718_v50  ;;  %v2431_v20 = vmax.f32 %v2303_v12, %v2335_v1  ;;  %v2240_v16 = vadd.f32 %v2208_v27, %v2176_v44  ;;  %v2211_v27 = vunpack.c.l.bf16 %v2051_v17 }
 0x38c   :  { %v1770_v25 = vpop.f32.mrf.mxu2 }
 0x38d   :  { %v2463_v8 = vpack.c.bf16 %v2431_v20, %v2431_v20  ;;  %v2272_v61 = vpack.c.bf16 %v2240_v16, %v2240_v16  ;;  %v1771_v32 = vadd.f32 %v1770_v25, %v1681_v60  ;;  %v2627_v60 = vpop.permute.xlu0 %2626  ;;  %v2060_v25 = vperm.slane %v4190_v26, %v3825_v10 }
 0x38f   :  { %v2527_v33 = vunpack.c.l.bf16 %v2463_v8  ;;  %v2304_v11 = vunpack.c.l.bf16 %v2272_v61  ;;  %v1825_v22 = vpack.c.bf16 %v1771_v32, %v1771_v32 }
 0x391   :  { %v2719_v57 = vmul.f32 %v2622_v15, %v2527_v33  ;;  %v2336_v5 = vmul.f32 0.010009766, %v2304_v11  ;;  %v2177_v35 = vunpack.c.l.bf16 %v1825_v22  ;;  %v1691_v22 = vpop.f32.mrf.mxu1  ;;  %v2212_v15 = vunpack.c.l.bf16 %v2060_v25 }
 0x393   :  { %v2750_v34 = vadd.f32 %v2749_v37, %v2719_v57  ;;  %v2432_v52 = vmax.f32 %v2304_v11, %v2336_v5  ;;  %v2241_v18 = vadd.f32 %v2209_v45, %v2177_v35  ;;  %v2637_v11 = vpop.permute.xlu2 %2636 }
 0x394   :  { %v1773_v29 = vpop.f32.mrf.mxu2 }
 0x395   :  { %v2464_v9 = vpack.c.bf16 %v2432_v52, %v2432_v52  ;;  %v2273_v53 = vpack.c.bf16 %v2241_v18, %v2241_v18  ;;  %v1774_v54 = vadd.f32 %v1773_v29, %v1684_v58 }
 0x397   :  { %v2528_v3 = vunpack.c.l.bf16 %v2464_v9  ;;  %v2305_v19 = vunpack.c.l.bf16 %v2273_v53  ;;  %v1826_v0 = vpack.c.bf16 %v1774_v54, %v1774_v54 }
 0x399   :  { %v2720_v42 = vmul.f32 %v2627_v60, %v2528_v3  ;;  %v2337_v55 = vmul.f32 0.010009766, %v2305_v19  ;;  %v2178_v43 = vunpack.c.l.bf16 %v1826_v0  ;;  %v2642_v3 = vpop.permute.xlu0 %2641 }
 0x39b   :  { %v2751_v21 = vadd.f32 %v2750_v34, %v2720_v42  ;;  %v2433_v28 = vmax.f32 %v2305_v19, %v2337_v55  ;;  %v2242_v49 = vadd.f32 %v2210_v14, %v2178_v43  ;;  %v1694_v42 = vpop.f32.mrf.mxu1 }
 0x39c   :  { %v1775_v24 = vpop.f32.mrf.mxu2 }
 0x39d   :  { %v2465_v41 = vpack.c.bf16 %v2433_v28, %v2433_v28  ;;  %v2274_v39 = vpack.c.bf16 %v2242_v49, %v2242_v49  ;;  %v1776_v36 = vadd.f32 %v1775_v24, %v1686_v31  ;;  %v2069_v31 = vperm.slane %v4192_v62, %v3825_v10 }
 0x39e   :  { %v2078_v49 = vperm.slane %v4210_v47, %v3825_v10  ;;  %v2281_v47 = vpack.c.bf16 %v4273_v6, %v4273_v6  ;;  %v2283_v6 = vpack.c.bf16 %v4299_v63, %v4299_v63 }
 0x39f   :  { %v2529_v23 = vunpack.c.l.bf16 %v2465_v41  ;;  %v2306_v12 = vunpack.c.l.bf16 %v2274_v39  ;;  %v1827_v2 = vpack.c.bf16 %v1776_v36, %v1776_v36  ;;  %v2213_v19 = vunpack.c.l.bf16 %v2069_v31 }
 0x3a1   :  { %v2721_v50 = vmul.f32 %v2632_v59, %v2529_v23  ;;  %v2338_v1 = vmul.f32 0.010009766, %v2306_v12  ;;  %v2179_v44 = vunpack.c.l.bf16 %v1827_v2  ;;  %v2214_v23 = vunpack.c.l.bf16 %v2078_v49 }
 0x3a3   :  { %v2752_v58 = vadd.f32 %v2751_v21, %v2721_v50  ;;  %v2434_v37 = vmax.f32 %v2306_v12, %v2338_v1  ;;  %v2243_v20 = vadd.f32 %v2211_v27, %v2179_v44  ;;  %v2280_v27 = vpack.c.bf16 %v4261_v30, %v4261_v30 }
 0x3a4   :  { %v1778_v16 = vpop.f32.mrf.mxu2 }
 0x3a5   :  { %v2466_v46 = vpack.c.bf16 %v2434_v37, %v2434_v37  ;;  %v2275_v7 = vpack.c.bf16 %v2243_v20, %v2243_v20  ;;  %v1779_v8 = vadd.f32 %v1778_v16, %v1689_v38  ;;  %v2647_v38 = vpop.permute.xlu1 %2646  ;;  %v4399_v20 = vld [vmem:[#allocation6_spill] sm:$0xff] }
 0x3a6   :  { %v2087_v16 = vperm.slane %v4399_v20, %v3825_v10  ;;  %v2657_v10 = vpop.permute.xlu0 %2656 }
 0x3a7   :  { %v2530_v61 = vunpack.c.l.bf16 %v2466_v46  ;;  %v2307_v32 = vunpack.c.l.bf16 %v2275_v7  ;;  %v1828_v33 = vpack.c.bf16 %v1779_v8, %v1779_v8  ;;  %v2312_v8 = vunpack.c.l.bf16 %v2280_v27 }
 0x3a9   :  { %v2722_v45 = vmul.f32 %v2637_v11, %v2530_v61  ;;  %v2339_v57 = vmul.f32 0.010009766, %v2307_v32  ;;  %v2180_v5 = vunpack.c.l.bf16 %v1828_v33  ;;  %v2282_v61 = vpack.c.bf16 %v4293_v13, %v4293_v13  ;;  %v2652_v11 = vpop.permute.xlu2 %2651 }
 0x3ab   :  { %v2753_v35 = vadd.f32 %v2752_v58, %v2722_v45  ;;  %v2435_v34 = vmax.f32 %v2307_v32, %v2339_v57  ;;  %v2244_v52 = vadd.f32 %v2212_v15, %v2180_v5  ;;  %v1696_v58 = vpop.f32.mrf.mxu1  ;;  %v2215_v15 = vunpack.c.l.bf16 %v2087_v16 }
 0x3ac   :  { %v1780_v18 = vpop.f32.mrf.mxu2 }
 0x3ad   :  { %v2467_v26 = vpack.c.bf16 %v2435_v34, %v2435_v34  ;;  %v2276_v29 = vpack.c.bf16 %v2244_v52, %v2244_v52  ;;  %v1781_v56 = vadd.f32 %v1780_v18, %v1691_v22  ;;  %v2313_v22 = vunpack.c.l.bf16 %v2281_v47 }
 0x3ae   :  { %v2314_v34 = vunpack.c.l.bf16 %v2282_v61  ;;  %v2284_v52 = vpack.c.bf16 %v4309_v48, %v4309_v48 }
 0x3af   :  { %v2531_v9 = vunpack.c.l.bf16 %v2467_v26  ;;  %v2308_v53 = vunpack.c.l.bf16 %v2276_v29  ;;  %v1829_v54 = vpack.c.bf16 %v1781_v56, %v1781_v56  ;;  %v2345_v26 = vmul.f32 0.010009766, %v2313_v22 }
 0x3b0   :  { %v2315_v29 = vunpack.c.l.bf16 %v2283_v6  ;;  %v2285_v56 = vpack.c.bf16 %v4323_v51, %v4323_v51 }
 0x3b1   :  { %v2723_v0 = vmul.f32 %v2642_v3, %v2531_v9  ;;  %v2340_v60 = vmul.f32 0.010009766, %v2308_v53  ;;  %v2181_v14 = vunpack.c.l.bf16 %v1829_v54  ;;  %v2346_v54 = vmul.f32 0.010009766, %v2314_v34  ;;  %v2667_v51 = vpop.permute.xlu2 %2666 }
 0x3b2   :  { %v2316_v3 = vunpack.c.l.bf16 %v2284_v52  ;;  %v2441_v48 = vmax.f32 %v2313_v22, %v2345_v26 }
 0x3b3   :  { %v2754_v55 = vadd.f32 %v2753_v35, %v2723_v0  ;;  %v2436_v43 = vmax.f32 %v2308_v53, %v2340_v60  ;;  %v2245_v21 = vadd.f32 %v2213_v19, %v2181_v14  ;;  %v2344_v35 = vmul.f32 0.010009766, %v2312_v8  ;;  %v2662_v14 = vpop.permute.xlu1 %2661 }
 0x3b4   :  { %v1783_v28 = vpop.f32.mrf.mxu2  ;;  %v2286_v19 = vpack.c.bf16 %v4327_v40, %v4327_v40  ;;  %v2473_v40 = vpack.c.bf16 %v2441_v48, %v2441_v48 }
 0x3b5   :  { %v2468_v62 = vpack.c.bf16 %v2436_v43, %v2436_v43  ;;  %v2277_v24 = vpack.c.bf16 %v2245_v21, %v2245_v21  ;;  %v1784_v17 = vadd.f32 %v1783_v28, %v1694_v42  ;;  %v2440_v53 = vmax.f32 %v2312_v8, %v2344_v35 }
 0x3b6   :  { %v2347_v42 = vmul.f32 0.010009766, %v2315_v29  ;;  %v2287_v43 = vpack.c.bf16 %v4335_v4, %v4335_v4 }
 0x3b7   :  { %v2532_v41 = vunpack.c.l.bf16 %v2468_v62  ;;  %v2309_v39 = vunpack.c.l.bf16 %v2277_v24  ;;  %v1830_v36 = vpack.c.bf16 %v1784_v17, %v1784_v17  ;;  %v2472_v49 = vpack.c.bf16 %v2440_v53, %v2440_v53 }
 0x3b8   :  { %v2442_v62 = vmax.f32 %v2314_v34, %v2346_v54  ;;  %v2348_v24 = vmul.f32 0.010009766, %v2316_v3  ;;  %v2318_v17 = vunpack.c.l.bf16 %v2286_v19 }
 0x3b9   :  { %v2724_v12 = vmul.f32 %v2647_v38, %v2532_v41  ;;  %v2341_v2 = vmul.f32 0.010009766, %v2309_v39  ;;  %v2182_v59 = vunpack.c.l.bf16 %v1830_v36  ;;  %v2672_v36 = vpop.permute.xlu0 %2671  ;;  %v2443_v38 = vmax.f32 %v2315_v29, %v2347_v42 }
 0x3ba   :  { %v2474_v27 = vpack.c.bf16 %v2442_v62, %v2442_v62 }
 0x3bb   :  { %v2755_v50 = vadd.f32 %v2754_v55, %v2724_v12  ;;  %v2437_v1 = vmax.f32 %v2309_v39, %v2341_v2  ;;  %v2246_v44 = vadd.f32 %v2214_v23, %v2182_v59  ;;  %v2317_v55 = vunpack.c.l.bf16 %v2285_v56  ;;  %v2677_v16 = vpop.permute.xlu1 %2676 }
 0x3bc   :  { %v1785_v37 = vpop.f32.mrf.mxu2  ;;  %v2319_v12 = vunpack.c.l.bf16 %v2287_v43  ;;  %v2536_v59 = vunpack.c.l.bf16 %v2472_v49  ;;  %v2475_v47 = vpack.c.bf16 %v2443_v38, %v2443_v38 }
 0x3bd   :  { %v2469_v25 = vpack.c.bf16 %v2437_v1, %v2437_v1  ;;  %v2278_v46 = vpack.c.bf16 %v2246_v44, %v2246_v44  ;;  %v1786_v7 = vadd.f32 %v1785_v37, %v1696_v58  ;;  %v2349_v23 = vmul.f32 0.010009766, %v2317_v55 }
 0x3be   :  { %v2350_v1 = vmul.f32 0.010009766, %v2318_v17  ;;  %v2537_v44 = vunpack.c.l.bf16 %v2473_v40  ;;  %v2351_v37 = vmul.f32 0.010009766, %v2319_v12 }
 0x3bf   :  { %v2533_v32 = vunpack.c.l.bf16 %v2469_v25  ;;  %v2310_v30 = vunpack.c.l.bf16 %v2278_v46  ;;  %v1831_v33 = vpack.c.bf16 %v1786_v7, %v1786_v7  ;;  %v2445_v58 = vmax.f32 %v2317_v55, %v2349_v23 }
 0x3c0   :  { %v2728_v25 = vmul.f32 %v2667_v51, %v2536_v59  ;;  %v2538_v46 = vunpack.c.l.bf16 %v2474_v27  ;;  %v2446_v8 = vmax.f32 %v2318_v17, %v2350_v1  ;;  %v2447_v22 = vmax.f32 %v2319_v12, %v2351_v37 }
 0x3c1   :  { %v2725_v45 = vmul.f32 %v2652_v11, %v2533_v32  ;;  %v2342_v57 = vmul.f32 0.010009766, %v2310_v30  ;;  %v2183_v5 = vunpack.c.l.bf16 %v1831_v33  ;;  %v2682_v32 = vpop.permute.xlu2 %2681  ;;  %v2539_v33 = vunpack.c.l.bf16 %v2475_v47 }
 0x3c2   :  { %v2477_v11 = vpack.c.bf16 %v2445_v58, %v2445_v58  ;;  %v2479_v52 = vpack.c.bf16 %v2447_v22, %v2447_v22 }
 0x3c3   :  { %v2756_v18 = vadd.f32 %v2755_v50, %v2725_v45  ;;  %v2438_v13 = vmax.f32 %v2310_v30, %v2342_v57  ;;  %v2247_v31 = vadd.f32 %v2215_v15, %v2183_v5  ;;  %v2444_v50 = vmax.f32 %v2316_v3, %v2348_v24  ;;  %v2687_v15 = vpop.permute.xlu0 %2686  ;;  %v2692_v29 = vpop.permute.xlu1 %2691 }
 0x3c4   :  { %v2729_v30 = vmul.f32 %v2672_v36, %v2537_v44  ;;  %v2730_v45 = vmul.f32 %v2677_v16, %v2538_v46  ;;  %v2478_v5 = vpack.c.bf16 %v2446_v8, %v2446_v8  ;;  %v2731_v35 = vmul.f32 %v2682_v32, %v2539_v33 }
 0x3c5   :  { %v2470_v9 = vpack.c.bf16 %v2438_v13, %v2438_v13  ;;  %v2279_v63 = vpack.c.bf16 %v2247_v31, %v2247_v31  ;;  %v2476_v7 = vpack.c.bf16 %v2444_v50, %v2444_v50  ;;  %v2541_v34 = vunpack.c.l.bf16 %v2477_v11 }
 0x3c6   :  { %v2542_v31 = vunpack.c.l.bf16 %v2478_v5 }
 0x3c7   :  { %v2534_v0 = vunpack.c.l.bf16 %v2470_v9  ;;  %v2311_v60 = vunpack.c.l.bf16 %v2279_v63  ;;  %v2540_v57 = vunpack.c.l.bf16 %v2476_v7  ;;  %v2733_v56 = vmul.f32 %v2692_v29, %v2541_v34 }
 0x3c8   :  { %v2543_v9 = vunpack.c.l.bf16 %v2479_v52 }
 0x3c9   :  { %v2726_v21 = vmul.f32 %v2657_v10, %v2534_v0  ;;  %v2343_v28 = vmul.f32 0.010009766, %v2311_v60  ;;  %v2732_v13 = vmul.f32 %v2687_v15, %v2540_v57  ;;  %v2697_v53 = vpop.permute.xlu2 %2696 }
 0x3ca   :  { %v2734_v54 = vmul.f32 %v2697_v53, %v2542_v31 }
 0x3cb   :  { %v2757_v41 = vadd.f32 %v2756_v18, %v2726_v21  ;;  %v2439_v39 = vmax.f32 %v2311_v60, %v2343_v28  ;;  %v2702_v19 = vpop.permute.xlu0 %2701  ;;  %v2777_v21 = vpop.permute.xlu1 %2776 }
 0x3cc   :  { %v2735_v0 = vmul.f32 %v2702_v19, %v2543_v9  ;;  %v2779_v51 = vperm.slane %v2777_v21, 0 }
 0x3cd   :  { %v2471_v2 = vpack.c.bf16 %v2439_v39, %v2439_v39 }
 0x3cf   :  { %v2535_v4 = vunpack.c.l.bf16 %v2471_v2 }
 0x3d1   :  { %v2727_v20 = vmul.f32 %v2662_v14, %v2535_v4 }
 0x3d3   :  { %v2758_v61 = vadd.f32 %v2757_v41, %v2727_v20 }
 0x3d5   :  { %v2759_v6 = vadd.f32 %v2758_v61, %v2728_v25 }
 0x3d7   :  { %v2760_v10 = vadd.f32 %v2759_v6, %v2729_v30 }
 0x3d9   :  { %v2761_v18 = vadd.f32 %v2760_v10, %v2730_v45 }
 0x3db   :  { %v2762_v26 = vadd.f32 %v2761_v18, %v2731_v35 }
 0x3dd   :  { %v2763_v63 = vadd.f32 %v2762_v26, %v2732_v13 }
 0x3df   :  { %v2764_v3 = vadd.f32 %v2763_v63, %v2733_v56 }
 0x3e1   :  { %v2765_v60 = vadd.f32 %v2764_v3, %v2734_v54 }
 0x3e3   :  { %v2766_v14 = vadd.f32 %v2765_v60, %v2735_v0 }
 0x3e5   :  { %v2767_v48 = vrot.slane %v2766_v14, 4 }
 0x3e7   :  { %v2768_v42 = vadd.f32 %v2767_v48, %v2766_v14 }
 0x3e9   :  { %v2769_v55 = vrot.slane %v2768_v42, 2 }
 0x3eb   :  { %v2770_v43 = vadd.f32 %v2769_v55, %v2768_v42 }
 0x3ed   :  { %v2771_v28 = vrot.slane %v2770_v43, 1 }
 0x3ef   :  { %v2772_v49 = vadd.f32 %v2771_v28, %v2770_v43 }
 0x3f1   :  { %v2780_v62 = vadd.f32 %v2779_v51, %v2772_v49 }
 0x3f3   :  { %2781 = vst [vmem:[#allocation3] sm:$0x1] %v2780_v62 }
 0x3f4   :  { %2792 = dma.vmem_to_hbm [thread:$0]  %s2788_s20, 16, %s2790_s0, [#allocation4]  }
 0x3f5   :  { %3093 = dma.done.wait [#allocation4], 16  }
 0x3f6   :  { %3094 = vsyncadd [#allocation4], 4294967280 }
 0x3f7   :  { %2797 = vsyncpa [#allocation4], 1 }

</bundles_post_ra>
